<compile_context>
chip_gen: v7x
topology: tpu7x:2x2x1
jax: 0.10.0
libtpu: 0.0.40
codegen_flags: <defaults>
</compile_context>

<pallas_src>
import jax
import jax.numpy as jnp
from jax import lax
from jax.experimental import pallas as pl
from jax.experimental.pallas import tpu as pltpu


def _ceil_to(a, b):
    return ((a + b - 1) // b) * b


def _mfg_linear_kernel(x_ref, mw_ref, sw_ref, ew_ref, mb_ref, sb_ref, eb_ref,
                       o_ref, zw_ref, zb_ref):
    # Grid is (j over out_feature tiles [outer], i over row tiles [inner]).
    # The weight/bias refs hold the same block for every i, so reparameterize once per j
    # and cache the sampled weights in VMEM scratch.
    @pl.when(pl.program_id(1) == 0)
    def _():
        zw_ref[...] = mw_ref[...] + jnp.exp(sw_ref[...]) * ew_ref[...]   # (tn, K)
        zb_ref[...] = mb_ref[...] + jnp.exp(sb_ref[...]) * eb_ref[...]   # (1, tn)

    # MXU matmul contracting the last dim of both operands: (tm, K) x (tn, K) -> (tm, tn).
    # No transpose of the weight tile -> no XLU relayout per step.
    y = lax.dot_general(
        x_ref[...], zw_ref[...],
        dimension_numbers=(((1,), (1,)), ((), ())),
        preferred_element_type=jnp.float32)
    o_ref[...] = (y + zb_ref[...]).astype(o_ref.dtype)


def _vmem_estimate_bytes(tm, tn, kp):
    f32 = 4
    return f32 * (2 * tm * kp          # x tile (double-buffered)
                  + 2 * 3 * tn * kp    # mean_w / sigma_w / eps_w tiles (double-buffered)
                  + 2 * tm * tn        # output tile (double-buffered)
                  + 2 * 3 * tn         # bias tiles
                  + tn * kp + tn)      # z_w / z_b scratch


def mean_field_gaussian_linear(x, mean_w, sigma_w, eps_w, mean_b, sigma_b, eps_b,
                               *, tm=256, tn=256):
    M, K = x.shape
    N, K2 = mean_w.shape
    assert K == K2
    out_dtype = x.dtype

    # Tile sizes: clamp to the (padded) problem, keep sublane/lane alignment.
    tm = _ceil_to(min(tm, _ceil_to(M, 8)), 8)
    tn = _ceil_to(min(tn, _ceil_to(N, 128)), 128)
    Kp = _ceil_to(K, 128)

    # Conservative VMEM budget (v7x has 64 MiB physical per TC); shrink tiles if needed.
    budget = 40 * (1 << 20)
    while _vmem_estimate_bytes(tm, tn, Kp) > budget and (tm > 8 or tn > 128):
        if tn > 128:
            tn = max(128, tn - 128)
        else:
            tm = max(8, _ceil_to(tm // 2, 8))

    Mp = _ceil_to(M, tm)
    Np = _ceil_to(N, tn)

    # Zero-pad to tile multiples (zeros are exact no-ops for this math: exp(0)*0 + 0 = 0).
    x_p = jnp.pad(x, ((0, Mp - M), (0, Kp - K)))
    mw_p = jnp.pad(mean_w, ((0, Np - N), (0, Kp - K)))
    sw_p = jnp.pad(sigma_w, ((0, Np - N), (0, Kp - K)))
    ew_p = jnp.pad(eps_w, ((0, Np - N), (0, Kp - K)))
    mb_p = jnp.pad(mean_b, (0, Np - N)).reshape(1, Np)
    sb_p = jnp.pad(sigma_b, (0, Np - N)).reshape(1, Np)
    eb_p = jnp.pad(eps_b, (0, Np - N)).reshape(1, Np)

    grid = (Np // tn, Mp // tm)   # (j: out-feature tiles OUTER, i: row tiles INNER)

    vmem_limit = int(max(32 * (1 << 20),
                         min(100 * (1 << 20), 2 * _vmem_estimate_bytes(tm, tn, Kp))))

    out_p = pl.pallas_call(
        _mfg_linear_kernel,
        out_shape=jax.ShapeDtypeStruct((Mp, Np), out_dtype),
        grid=grid,
        in_specs=[
            pl.BlockSpec((tm, Kp), lambda j, i: (i, 0)),   # x
            pl.BlockSpec((tn, Kp), lambda j, i: (j, 0)),   # mean_w   (constant across i)
            pl.BlockSpec((tn, Kp), lambda j, i: (j, 0)),   # sigma_w  (constant across i)
            pl.BlockSpec((tn, Kp), lambda j, i: (j, 0)),   # eps_w    (constant across i)
            pl.BlockSpec((1, tn), lambda j, i: (0, j)),    # mean_b
            pl.BlockSpec((1, tn), lambda j, i: (0, j)),    # sigma_b
            pl.BlockSpec((1, tn), lambda j, i: (0, j)),    # eps_b
        ],
        out_specs=pl.BlockSpec((tm, tn), lambda j, i: (i, j)),
        scratch_shapes=[
            pltpu.VMEM((tn, Kp), jnp.float32),             # cached z_w
            pltpu.VMEM((1, tn), jnp.float32),              # cached z_b
        ],
        compiler_params=pltpu.CompilerParams(
            # Inner (row) axis must stay "arbitrary" so every core runs i==0 and fills the
            # z_w cache; the out-feature axis can be split across TensorCores on v7x.
            dimension_semantics=("parallel", "arbitrary"),
            vmem_limit_bytes=vmem_limit),
    )(x_p, mw_p, sw_p, ew_p, mb_p, sb_p, eb_p)

    return out_p[:M, :N]


if __name__ == "__main__":
    # Small shapes consistent with an nn.Linear-style module; chosen non-tile-multiple on
    # M/N to also exercise the padding path (grid = (3, 2) with 256x256 tiles).
    batch, in_features, out_features = 384, 256, 640
    prior_sigma_w = 1.0
    prior_sigma_b = 1.0
    init_sigma_scale = 1e-7

    key = jax.random.PRNGKey(0)
    k_x, k_mw, k_mb, k_ew, k_eb = jax.random.split(key, 5)

    # Deterministic "parameter" init mirroring the PyTorch __init__:
    #   mean_* = U[0,1) - 0.5 ; sigma_* = log(init_sigma_scale * prior_sigma)
    mean_w = jax.random.uniform(k_mw, (out_features, in_features), jnp.float32) - 0.5
    sigma_w = jnp.full((out_features, in_features),
                       jnp.log(init_sigma_scale * prior_sigma_w), jnp.float32)
    mean_b = jax.random.uniform(k_mb, (out_features,), jnp.float32) - 0.5
    sigma_b = jnp.full((out_features,),
                       jnp.log(init_sigma_scale * prior_sigma_b), jnp.float32)

    # epsilon ~ N(0, 1) (sampled once per forward, as in the torch module)
    eps_w = jax.random.normal(k_ew, (out_features, in_features), jnp.float32)
    eps_b = jax.random.normal(k_eb, (out_features,), jnp.float32)

    x = jax.random.normal(k_x, (batch, in_features), jnp.float32)

    out = mean_field_gaussian_linear(x, mean_w, sigma_w, eps_w,
                                     mean_b, sigma_b, eps_b)
    out = jax.block_until_ready(out)

    # Pure-JAX reference check of the same math (high-precision matmul for the reference).
    z_w = mean_w + jnp.exp(sigma_w) * eps_w
    z_b = mean_b + jnp.exp(sigma_b) * eps_b
    ref = jnp.dot(x, z_w.T, precision=jax.lax.Precision.HIGHEST) + z_b
    assert out.shape == (batch, out_features)
    assert out.dtype == x.dtype
    assert jnp.allclose(out, ref, atol=1e-4, rtol=1e-4)

    print("KERNEL_OK")
</pallas_src>

<mosaic_0001>
module attributes {stable_mosaic.version = 11 : i64} {
  func.func @_mfg_linear_kernel(%arg0: i32, %arg1: i32, %arg2: memref<256x256xf32, #tpu.memory_space<vmem>>, %arg3: memref<256x256xf32, #tpu.memory_space<vmem>>, %arg4: memref<256x256xf32, #tpu.memory_space<vmem>>, %arg5: memref<256x256xf32, #tpu.memory_space<vmem>>, %arg6: memref<1x256xf32, #tpu.memory_space<vmem>>, %arg7: memref<1x256xf32, #tpu.memory_space<vmem>>, %arg8: memref<1x256xf32, #tpu.memory_space<vmem>>, %arg9: memref<256x256xf32, #tpu.memory_space<vmem>>, %arg10: memref<256x256xf32, #tpu.memory_space<vmem>>, %arg11: memref<1x256xf32, #tpu.memory_space<vmem>>) attributes {dimension_semantics = [#tpu.dimension_semantics<parallel>, #tpu.dimension_semantics<arbitrary>], iteration_bounds = array<i64: 3, 2>, scalar_prefetch = 0 : i64, scratch_operands = 2 : i64, tpu.core_type = #tpu.core_type<tc>, window_params = [{transform_indices = @transform_0, window_bounds = array<i64: 256, 256>}, {transform_indices = @transform_1, window_bounds = array<i64: 256, 256>}, {transform_indices = @transform_2, window_bounds = array<i64: 256, 256>}, {transform_indices = @transform_3, window_bounds = array<i64: 256, 256>}, {transform_indices = @transform_4, window_bounds = array<i64: 1, 256>}, {transform_indices = @transform_5, window_bounds = array<i64: 1, 256>}, {transform_indices = @transform_6, window_bounds = array<i64: 1, 256>}, {transform_indices = @transform_7, window_bounds = array<i64: 256, 256>}]} {
    %c0_i32 = arith.constant 0 : i32
    %0 = arith.cmpi eq, %arg1, %c0_i32 : i32
    %1 = arith.extui %0 : i1 to i32
    %c0_i32_0 = arith.constant 0 : i32
    %2 = arith.cmpi ne, %1, %c0_i32_0 : i32
    scf.if %2 {
      %c0_8 = arith.constant 0 : index
      %c0_9 = arith.constant 0 : index
      %10 = vector.load %arg3[%c0_8, %c0_9] : memref<256x256xf32, #tpu.memory_space<vmem>>, vector<256x256xf32>
      %c0_10 = arith.constant 0 : index
      %c0_11 = arith.constant 0 : index
      %11 = vector.load %arg4[%c0_10, %c0_11] : memref<256x256xf32, #tpu.memory_space<vmem>>, vector<256x256xf32>
      %12 = math.exp %11 : vector<256x256xf32>
      %c0_12 = arith.constant 0 : index
      %c0_13 = arith.constant 0 : index
      %13 = vector.load %arg5[%c0_12, %c0_13] : memref<256x256xf32, #tpu.memory_space<vmem>>, vector<256x256xf32>
      %14 = arith.mulf %12, %13 : vector<256x256xf32>
      %15 = arith.addf %10, %14 : vector<256x256xf32>
      %c0_14 = arith.constant 0 : index
      %c0_15 = arith.constant 0 : index
      %16 = vector.load %arg10[%c0_14, %c0_15] : memref<256x256xf32, #tpu.memory_space<vmem>>, vector<256x256xf32>
      tpu.vector_store %arg10[%c0_14, %c0_15], %15 {strides = array<i32>} : memref<256x256xf32, #tpu.memory_space<vmem>>, vector<256x256xf32>,
      %c0_16 = arith.constant 0 : index
      %c0_17 = arith.constant 0 : index
      %17 = vector.load %arg6[%c0_16, %c0_17] : memref<1x256xf32, #tpu.memory_space<vmem>>, vector<1x256xf32>
      %c0_18 = arith.constant 0 : index
      %c0_19 = arith.constant 0 : index
      %18 = vector.load %arg7[%c0_18, %c0_19] : memref<1x256xf32, #tpu.memory_space<vmem>>, vector<1x256xf32>
      %19 = math.exp %18 : vector<1x256xf32>
      %c0_20 = arith.constant 0 : index
      %c0_21 = arith.constant 0 : index
      %20 = vector.load %arg8[%c0_20, %c0_21] : memref<1x256xf32, #tpu.memory_space<vmem>>, vector<1x256xf32>
      %21 = arith.mulf %19, %20 : vector<1x256xf32>
      %22 = arith.addf %17, %21 : vector<1x256xf32>
      %c0_22 = arith.constant 0 : index
      %c0_23 = arith.constant 0 : index
      %23 = vector.load %arg11[%c0_22, %c0_23] : memref<1x256xf32, #tpu.memory_space<vmem>>, vector<1x256xf32>
      tpu.vector_store %arg11[%c0_22, %c0_23], %22 {strides = array<i32>} : memref<1x256xf32, #tpu.memory_space<vmem>>, vector<1x256xf32>,
    } else {
    }
    %c0 = arith.constant 0 : index
    %c0_1 = arith.constant 0 : index
    %3 = vector.load %arg2[%c0, %c0_1] : memref<256x256xf32, #tpu.memory_space<vmem>>, vector<256x256xf32>
    %c0_2 = arith.constant 0 : index
    %c0_3 = arith.constant 0 : index
    %4 = vector.load %arg10[%c0_2, %c0_3] : memref<256x256xf32, #tpu.memory_space<vmem>>, vector<256x256xf32>
    %cst = arith.constant dense<0.000000e+00> : vector<256x256xf32>
    %5 = tpu.matmul %3, %4, %cst {dimension_numbers = #tpu.dot_dimension_numbers<[1], [1], [0], [0], [0, 0, 1, 0], [], []>} : vector<256x256xf32>, vector<256x256xf32>, vector<256x256xf32> -> vector<256x256xf32>
    %c0_4 = arith.constant 0 : index
    %c0_5 = arith.constant 0 : index
    %6 = vector.load %arg11[%c0_4, %c0_5] : memref<1x256xf32, #tpu.memory_space<vmem>>, vector<1x256xf32>
    %7 = vector.broadcast %6 : vector<1x256xf32> to vector<256x256xf32>
    %8 = arith.addf %5, %7 : vector<256x256xf32>
    %c0_6 = arith.constant 0 : index
    %c0_7 = arith.constant 0 : index
    %9 = vector.load %arg9[%c0_6, %c0_7] : memref<256x256xf32, #tpu.memory_space<vmem>>, vector<256x256xf32>
    tpu.vector_store %arg9[%c0_6, %c0_7], %8 {strides = array<i32>} : memref<256x256xf32, #tpu.memory_space<vmem>>, vector<256x256xf32>,
    return
  }
  func.func @transform_0(%arg0: i32, %arg1: i32) -> (i32, i32) {
    %c0_i32 = arith.constant 0 : i32
    %c0_i32_0 = arith.constant 0 : i32
    return %arg1, %c0_i32 : i32, i32
  }
  func.func @transform_1(%arg0: i32, %arg1: i32) -> (i32, i32) {
    %c0_i32 = arith.constant 0 : i32
    %c0_i32_0 = arith.constant 0 : i32
    return %arg0, %c0_i32 : i32, i32
  }
  func.func @transform_2(%arg0: i32, %arg1: i32) -> (i32, i32) {
    %c0_i32 = arith.constant 0 : i32
    %c0_i32_0 = arith.constant 0 : i32
    return %arg0, %c0_i32 : i32, i32
  }
  func.func @transform_3(%arg0: i32, %arg1: i32) -> (i32, i32) {
    %c0_i32 = arith.constant 0 : i32
    %c0_i32_0 = arith.constant 0 : i32
    return %arg0, %c0_i32 : i32, i32
  }
  func.func @transform_4(%arg0: i32, %arg1: i32) -> (i32, i32) {
    %c0_i32 = arith.constant 0 : i32
    %c0_i32_0 = arith.constant 0 : i32
    return %c0_i32, %arg0 : i32, i32
  }
  func.func @transform_5(%arg0: i32, %arg1: i32) -> (i32, i32) {
    %c0_i32 = arith.constant 0 : i32
    %c0_i32_0 = arith.constant 0 : i32
    return %c0_i32, %arg0 : i32, i32
  }
  func.func @transform_6(%arg0: i32, %arg1: i32) -> (i32, i32) {
    %c0_i32 = arith.constant 0 : i32
    %c0_i32_0 = arith.constant 0 : i32
    return %c0_i32, %arg0 : i32, i32
  }
  func.func @transform_7(%arg0: i32, %arg1: i32) -> (i32, i32) {
    %c0_i32 = arith.constant 0 : i32
    return %arg1, %arg0 : i32, i32
  }
}

</mosaic_0001>

<bundles_post_ra>
// kernel: tpu_custom_call.1
= control target key start
LH: loop header
LB: loop body
LE: loop exit
PB: predicated region body
PF: predicated region fallthrough
CT: control target
= control target key end

     0   :  { %s3577_s0 = inlined_call_operand.hbm [shape: f32[512,256], index: 0, kind: input, shape index: {}]   ;;  %s3578_s1 = inlined_call_operand.hbm [shape: f32[768,256], index: 1, kind: input, shape index: {}]   ;;  %s3579_s2 = inlined_call_operand.hbm [shape: f32[768,256], index: 2, kind: input, shape index: {}]   ;;  %s3580_s3 = inlined_call_operand.hbm [shape: f32[768,256], index: 3, kind: input, shape index: {}]   ;;  %s3581_s4 = inlined_call_operand.hbm [shape: f32[1,768], index: 4, kind: input, shape index: {}]   ;;  %s3582_s5 = inlined_call_operand.hbm [shape: f32[1,768], index: 5, kind: input, shape index: {}]   ;;  %s3583_s6 = inlined_call_operand.hbm [shape: f32[1,768], index: 6, kind: input, shape index: {}]   ;;  %s3584_s7 = inlined_call_operand.hbm [shape: f32[512,768], index: 7, kind: output, shape index: {}]  }
   0x1   :  { %3616 = sst [smem:[#allocation37_spill]] %s3577_s0 }
   0x2   :  { %3617 = sst [smem:[#allocation38_spill]] %s3578_s1 }
   0x3   :  { %3618 = sst [smem:[#allocation39_spill]] %s3579_s2 }
   0x4   :  { %3619 = sst [smem:[#allocation40_spill]] %s3580_s3 }
   0x5   :  { %3620 = sst [smem:[#allocation41_spill]] %s3581_s4 }
   0x6   :  { %3621 = sst [smem:[#allocation42_spill]] %s3582_s5 }
   0x7   :  { %3622 = sst [smem:[#allocation43_spill]] %s3583_s6 }
   0x8   :  { %3623 = sst [smem:[#allocation44_spill]] %s3584_s7 }
   0x9   :  { %12 = vsyncpa [#allocation5], 0 }
   0xa   :  { %14 = vsyncpa [#allocation5 + $0x1], 0 }
   0xb   :  { %15 = vsyncpa [#allocation8], 0 }
   0xc   :  { %17 = vsyncpa [#allocation8 + $0x1], 0 }
   0xd   :  { %18 = vsyncpa [#allocation11], 0 }
   0xe   :  { %20 = vsyncpa [#allocation11 + $0x1], 0 }
   0xf   :  { %21 = vsyncpa [#allocation14], 0 }
  0x10   :  { %23 = vsyncpa [#allocation14 + $0x1], 0 }
  0x11   :  { %24 = vsyncpa [#allocation6], 0 }
  0x12   :  { %26 = vsyncpa [#allocation6 + $0x1], 0  ;;  %s2639_s24 = smov 0   ;;  %s2641_s25 = smov 0  }
  0x13   :  { %s2643_s26 = smov 0   ;;  %s2645_s27 = smov 0  }
  0x14   :  { %s2647_s28 = smov 0   ;;  %s2649_s29 = smov 0  }
  0x15   :  { %s2651_s30 = smov 0   ;;  %s2653_s8 = smov 0  }
  0x16   :  { %s2655_s9 = smov 0   ;;  %s2657_s10 = smov 0  }
  0x17   :  { %s2659_s11 = smov 0   ;;  %s2661_s12 = smov 0  }
  0x18   :  { %s2663_s13 = smov 0   ;;  %s2665_s14 = smov 0  }
  0x19 LB: > { %3624 = sst [smem:[#allocation22_spill]] %s2532_s24  ;;  %p3590_p0 = scmp.eq.s32.totalorder %s2584_s14, 0  ;;  %s2584_s14 = sphi %s2665_s14, %s32_s14   ;;  %s2580_s13 = sphi %s2663_s13, %s3700_s13   ;;  %s2576_s12 = sphi %s2661_s12, %s3699_s12   ;;  %s2572_s11 = sphi %s2659_s11, %s3698_s11   ;;  %s2568_s10 = sphi %s2657_s10, %s3697_s10   ;;  %s2564_s9 = sphi %s2655_s9, %s3696_s9   ;;  %s2560_s8 = sphi %s2653_s8, %s3695_s8   ;;  %s2556_s30 = sphi %s2651_s30, %s3694_s30   ;;  %s2552_s29 = sphi %s2649_s29, %s3706_s29   ;;  %s2548_s28 = sphi %s2647_s28, %s3705_s28   ;;  %s2544_s27 = sphi %s2645_s27, %s3704_s27   ;;  %s2540_s26 = sphi %s2643_s26, %s3703_s26   ;;  %s2536_s25 = sphi %s2641_s25, %s3702_s25   ;;  %s2532_s24 = sphi %s2639_s24, %s3701_s24  }
  0x1a   : > { %3625 = sst [smem:[#allocation23_spill]] %s2560_s8  ;;  %p84_p1 = scmp.ne.s32.totalorder %s2552_s29, %s2548_s28 }
  0x1b   : > { %3626 = sst [smem:[#allocation24_spill]] %s2564_s9  ;;  %p3589_p3 = scmp.lt.s32.totalorder %s2584_s14, 6 }
  0x1c   : > { %3627 = sst [smem:[#allocation25_spill]] %s2568_s10  ;;  %p86_p4 = por %p84_p1, %p3590_p0 }
  0x1d   : > { %3628 = sst [smem:[#allocation26_spill]] %s2572_s11  ;;  %s2719_s16 = sand.u32 1, %s2584_s14  }
  0x1e   : > { %3629 = sst [smem:[#allocation27_spill]] %s2576_s12  ;;  %s3586_s17 = sand.u32 1, %s2552_s29  }
  0x1f   : > { %3630 = sst [smem:[#allocation28_spill]] %s2580_s13  ;;  %s2724_s18 = sshll.u32 %s3586_s17, 9 }
  0x20   : > { %3631 = sst [smem:[#allocation29_spill]] %s2724_s18  ;;  %s2727_s19 = sshll.u32 %s2580_s13, 13 }
  0x21   : > { %s3632_s1 = sld [smem:[#allocation38_spill]]  ;;  %s298_s23 = scalar_lea.vmem [#allocation7], %s2724_s18 }
  0x22   : > { %s306_s15 = sshll.u32 %s298_s23, 4  ;;  %p2738_p5 = pnand %p3589_p3, %p86_p4  ;;  %s2742_s15 = int_to_ptr.vmem [resolvable:$true] %s306_s15 }
  0x24   : > { %s3633_s7 = scalar_select %p2738_p5, 1, 0 }
  0x25   : > { %p2751_p9 = pneg %p2738_p5 }
  0x27   : > { %s2733_s22 = scalar_lea.hbm %s3632_s1, %s2727_s19  ;;  %s2221_s10 = scalar_lea.hbm %s3632_s1, 24576 }
  0x28   : > { %s2216_s20 = scalar_lea.hbm %s2733_s22, 8192  ;;  %p2222_p12 = scmp.lt.u32.totalorder %s2733_s22, %s3632_s1 }
  0x29   : > { %p2217_p8 = scmp.ne.s32.totalorder %s2733_s22, %s2216_s20  ;;  %p2223_p13 = scmp.lt.u32.totalorder %s2221_s10, %s2216_s20 }
  0x2a   : > { %p2225_p4 = scmp.lt.u32.totalorder %s2216_s20, %s2733_s22 }
  0x2b   : > { %p2219_p10 = pnand %p2751_p9, %p2217_p8  ;;  %p2224_p1 = por %p2223_p13, %p2222_p12 }
  0x2d   : > { %p2220_p11 = pneg %p2219_p10  ;;  %p2226_p3 = por %p2225_p4, %p2224_p1 }
  0x2f   : > { %p2227_p2 = pnand %p2226_p3, %p2220_p11 }
  0x31   : > { %2230 = shalt.err (!%p2227_p2)
}
  0x32   : > { %s2231_s17 = scalar_lea.vmem %s2742_s15, 8192  ;;  %s2586_s11 = smov [#allocation7]  }
  0x33   : > { %p2232_p8 = scmp.ne.s32.totalorder %s2742_s15, %s2231_s17  ;;  %s2236_s23 = sshll.u32 %s2586_s11, 4  ;;  %s2237_s23 = int_to_ptr.vmem [resolvable:$false] %s2236_s23 }
  0x34   : > { %s2238_s4 = scalar_lea.vmem %s2237_s23, 16384  ;;  %p2239_p6 = scmp.lt.s32.totalorder %s2742_s15, %s2237_s23 }
  0x35   : > { %p2234_p10 = pnand %p2232_p8, %p2751_p9  ;;  %p2240_p7 = scmp.lt.s32.totalorder %s2238_s4, %s2231_s17 }
  0x37   : > { %p2235_p0 = pneg %p2234_p10  ;;  %p2241_p12 = por %p2240_p7, %p2239_p6 }
  0x39   : > { %p2242_p13 = pnand %p2241_p12, %p2235_p0 }
  0x3b   : > { %2245 = shalt.err (!%p2242_p13)
}
  0x3c   : > { %s3593_s6 = smov 256   ;;  %s3595_s10 = smov 16  }
  0x3d   : > { %s3635_s17 = scalar_lea.sflag [#allocation8], %s2719_s16  ;;  %p3636_p0 = scmp.lt.s32.totalorder %s2584_s14, 7 }
  0x3e   : > { %1947 = dma.hbm_to_vmem [thread:$0]  (!%p2738_p5), %s2733_s22, 8192, %s2742_s15, %s3635_s17, %s3593_s6, %s3593_s6, %s3595_s10  }
  0x3f   : > { %p3637_p2 = scmp.ge.s32.totalorder %s2584_s14, 1  ;;  %s3640_s3 = sld [smem:[#allocation40_spill]] }
  0x40   : > { %s342_s1 = scalar_lea.vmem [#allocation10], %s2724_s18  ;;  %s3641_s0 = sand.u32 1, %s2552_s29  }
  0x41   : > { %p2783_p3 = pnand %p3637_p2, %p3636_p0  ;;  %s350_s2 = sshll.u32 %s342_s1, 4  ;;  %s2798_s2 = int_to_ptr.vmem [resolvable:$true] %s350_s2 }
  0x42   : > { %s2796_s24 = sshll.u32 %s3641_s0, 1  ;;  %s2801_s15 = sshll.u32 %s2580_s13, 5 }
  0x43   : > { %s3638_s20 = scalar_select %p2783_p3, 1, 0 }
  0x44   : > { %3642 = sst [smem:[#allocation31_spill]] %s2796_s24  ;;  %s3599_s22 = scalar_lea.sflag [#allocation11], %s2719_s16 }
  0x45   : > { %3639 = sst [smem:[#allocation30_spill]] %s3638_s20  ;;  %s2791_s4 = scalar_lea.hbm %s3640_s3, %s2727_s19 }
  0x46   : > { %s2246_s17 = scalar_lea.hbm %s2791_s4, 8192  ;;  %s2251_s6 = scalar_lea.hbm %s3640_s3, 24576 }
  0x47   : > { %p2247_p6 = scmp.ne.s32.totalorder %s2791_s4, %s2246_s17  ;;  %p2252_p1 = scmp.lt.u32.totalorder %s2791_s4, %s3640_s3 }
  0x48   : > { %p2253_p4 = scmp.lt.u32.totalorder %s2251_s6, %s2246_s17  ;;  %p2255_p10 = scmp.lt.u32.totalorder %s2246_s17, %s2791_s4 }
  0x49   : > { %p2249_p7 = pnand %p2247_p6, %p2751_p9 }
  0x4a   : > { %p2254_p8 = por %p2253_p4, %p2252_p1 }
  0x4b   : > { %p2250_p11 = pneg %p2249_p7 }
  0x4c   : > { %p2256_p12 = por %p2255_p10, %p2254_p8 }
  0x4e   : > { %p2257_p13 = pnand %p2256_p12, %p2250_p11 }
  0x50   : > { %2260 = shalt.err (!%p2257_p13)
}
  0x51   : > { %s2261_s0 = scalar_lea.vmem %s2798_s2, 8192  ;;  %s2589_s1 = smov [#allocation10]  }
  0x52   : > { %p2262_p0 = scmp.ne.s32.totalorder %s2798_s2, %s2261_s0  ;;  %s2266_s11 = sshll.u32 %s2589_s1, 4  ;;  %s2267_s11 = int_to_ptr.vmem [resolvable:$false] %s2266_s11 }
  0x53   : > { %s2268_s10 = scalar_lea.vmem %s2267_s11, 16384  ;;  %p2269_p7 = scmp.lt.s32.totalorder %s2798_s2, %s2267_s11 }
  0x54   : > { %p2264_p2 = pnand %p2262_p0, %p2751_p9  ;;  %p2270_p3 = scmp.lt.s32.totalorder %s2268_s10, %s2261_s0 }
  0x56   : > { %p2265_p6 = pneg %p2264_p2  ;;  %p2271_p1 = por %p2270_p3, %p2269_p7 }
  0x58   : > { %p2272_p4 = pnand %p2271_p1, %p2265_p6 }
  0x5a   : > { %2275 = shalt.err (!%p2272_p4)
}
  0x5b   : > { %s3643_s6 = smov 16   ;;  %s3644_s20 = smov 256  }
  0x5c   : > { %1953 = dma.hbm_to_vmem [thread:$0]  (!%p2738_p5), %s2791_s4, 8192, %s2798_s2, %s3599_s22, %s3644_s20, %s3644_s20, %s3643_s6  }
  0x5d   : > { %s3645_s5 = sld [smem:[#allocation42_spill]]  ;;  %s383_s1 = scalar_lea.vmem [#allocation13], %s2796_s24 }
  0x5e   : > { %s391_s11 = sshll.u32 %s383_s1, 4  ;;  %s392_s11 = int_to_ptr.vmem [resolvable:$true] %s391_s11 }
  0x63   : > { %s2834_s0 = scalar_lea.hbm %s3645_s5, %s2801_s15  ;;  %s2281_s4 = scalar_lea.hbm %s3645_s5, 96 }
  0x64   : > { %s2276_s3 = scalar_lea.hbm %s2834_s0, 32  ;;  %p2282_p10 = scmp.lt.u32.totalorder %s2834_s0, %s3645_s5 }
  0x65   : > { %p2277_p3 = scmp.ne.s32.totalorder %s2834_s0, %s2276_s3  ;;  %p2283_p12 = scmp.lt.u32.totalorder %s2281_s4, %s2276_s3 }
  0x66   : > { %p2285_p0 = scmp.lt.u32.totalorder %s2276_s3, %s2834_s0 }
  0x67   : > { %p2279_p11 = pnand %p2277_p3, %p2751_p9  ;;  %p2284_p13 = por %p2283_p12, %p2282_p10 }
  0x69   : > { %p2280_p8 = pneg %p2279_p11  ;;  %p2286_p2 = por %p2285_p0, %p2284_p13 }
  0x6b   : > { %p2287_p6 = pnand %p2286_p2, %p2280_p8 }
  0x6d   : > { %2290 = shalt.err (!%p2287_p6)
}
  0x6e   : > { %s2291_s1 = scalar_lea.vmem %s392_s11, 32  ;;  %s2590_s22 = smov [#allocation13]  }
  0x6f   : > { %p2292_p7 = scmp.ne.s32.totalorder %s392_s11, %s2291_s1  ;;  %s2296_s10 = sshll.u32 %s2590_s22, 4  ;;  %s2297_s10 = int_to_ptr.vmem [resolvable:$false] %s2296_s10 }
  0x70   : > { %s2298_s18 = scalar_lea.vmem %s2297_s10, 64  ;;  %p2299_p3 = scmp.lt.s32.totalorder %s392_s11, %s2297_s10 }
  0x71   : > { %p2294_p1 = pnand %p2292_p7, %p2751_p9  ;;  %p2300_p11 = scmp.lt.s32.totalorder %s2298_s18, %s2291_s1 }
  0x73   : > { %p2295_p4 = pneg %p2294_p1  ;;  %p2301_p5 = por %p2300_p11, %p2299_p3 }
  0x75   : > { %p2302_p10 = pnand %p2301_p5, %p2295_p4 }
  0x77   : > { %2305 = shalt.err (!%p2302_p10)
}
  0x78   : > { %p3646_p12 = scmp.ne.s32.totalorder %s3633_s7, 0  ;;  %s3647_s3 = scalar_lea.sflag [#allocation14], %s2719_s16 }
  0x79   : > { %s2858_s22 = sadd.s32 4294967295, %s2584_s14   ;;  %s1772_s10 = sadd.s32 4294967294, %s2584_s14  }
  0x7a   : > { %1959 = dma.hbm_to_vmem [thread:$0]  (!%p3646_p12), %s2834_s0, 32, %s392_s11, %s3647_s3  }
  0x7b   : > { %s41_s2 = sadd.s32 1, %s2576_s12  ;;  %s44_s4 = sadd.s32 1, %s2580_s13 }
  0x7c   : > { %p42_p5 = scmp.ge.s32.totalorder %s41_s2, 2  ;;  %s51_s17 = sadd.s32 1, %s2564_s9 }
  0x7d   : > { %p58_p8 = scmp.ne.s32.totalorder %s2564_s9, %s2560_s8  ;;  %p3649_p13 = scmp.eq.s32.totalorder %s2584_s14, 0 }
  0x7e   : > { %s3708_s2 = smov (%p42_p5, %s41_s2), 0  ;;  %s3710_s4 = smov (!%p42_p5, %s44_s4), %s2580_s13 }
  0x7f   : > { %3648 = sst [smem:[#allocation32_spill]] %s3708_s2  ;;  %s48_s0 = ssub.s32 %s2576_s12, %s3708_s2 }
  0x80   : > { %p2873_p0 = por %p3649_p13, %p58_p8  ;;  %p46_p2 = scmp.ge.s32.totalorder %s3710_s4, 3 }
  0x81   : > { %s3651_s23 = sld [smem:[#allocation22_spill]]  ;;  %p49_p6 = scmp.eq.s32.totalorder %s48_s0, 0 }
  0x82   : > { %p64_p7 = scmp.ne.s32.totalorder %s2560_s8, %s2556_s30  ;;  %p65_p1 = scmp.eq.s32.totalorder %s2858_s22, 0 }
  0x83   : > { %s3712_s4 = smov (%p46_p2, %s3710_s4), 0  ;;  %p3655_p11 = scmp.ne.s32.totalorder %s2548_s28, %s2544_s27 }
  0x84   : > { %3652 = sst [smem:[#allocation33_spill]] %s3712_s4  ;;  %p2885_p4 = por %p65_p1, %p64_p7 }
  0x85   : > { %s2883_s1 = scalar_select %p49_p6, %s2564_s9, %s51_s17  }
  0x86   : > { %s3654_s18 = scalar_select %p2885_p4, 1, 0 }
  0x87   : > { %3653 = sst [smem:[#allocation34_spill]] %s2883_s1  ;;  %s74_s3 = ssub.s32 %s2580_s13, %s3712_s4 }
  0x88   : > { %p75_p3 = scmp.eq.s32.totalorder %s74_s3, 0  ;;  %p2894_p10 = por %p3655_p11, %p65_p1 }
  0x89   : > { %s232_s30 = sor.u32 %s74_s3, %s48_s0  ;;  %s235_s2 = sadd.s32 1, %s2540_s26 }
  0x8a   : > { %s3656_s5 = scalar_select %p2894_p10, 1, 0 }
  0x8b   : > { %s3658_s8 = sadd.s32 1, %s2552_s29  ;;  %p233_p5 = scmp.eq.s32.totalorder %s232_s30, 0 }
  0x8c   : > { %3657 = sst [smem:[#allocation35_spill]] %s3656_s5  ;;  %p245_p8 = scmp.ne.s32.totalorder %s2540_s26, %s2536_s25 }
  0x8d   : > { %s2902_s24 = scalar_select %p75_p3, %s2552_s29, %s3658_s8  }
  0x8e   : > { %p246_p13 = scmp.eq.s32.totalorder %s2858_s22, 5  ;;  %p251_p2 = scmp.ne.s32.totalorder %s2536_s25, %s3651_s23 }
  0x8f   : > { %3659 = sst [smem:[#allocation36_spill]] %s2902_s24  ;;  %p252_p7 = scmp.eq.s32.totalorder %s1772_s10, 5 }
  0x90   : > { %s2910_s17 = scalar_select %p233_p5, %s2540_s26, %s235_s2  }
  0x91   : > { %p2912_p6 = por %p246_p13, %p245_p8  ;;  %s272_s27 = sand.u32 1, %s2564_s9  }
  0x92   : > { %s1818_s13 = sshll.u32 %s2576_s12, 13  ;;  %p2918_p1 = por %p252_p7, %p251_p2 }
  0x93   : > { %s3660_s4 = scalar_select %p2912_p6, 1, 0 }
  0x94   : > { %s3661_s1 = scalar_select %p2918_p1, 1, 0 }
  0x95   : > { %s1775_s0 = sshll.u32 %s272_s27, 9  ;;  %s3662_s30 = sld [smem:[#allocation37_spill]] }
  0x96   : > { %p3664_p3 = scmp.lt.s32.totalorder %s2584_s14, 6  ;;  %s276_s2 = scalar_lea.vmem [#allocation4], %s1775_s0 }
  0x97   : > { %s284_s23 = sshll.u32 %s276_s2, 4  ;;  %s2937_s12 = scalar_lea.sflag [#allocation5], %s272_s27  ;;  %s2935_s23 = int_to_ptr.vmem [resolvable:$true] %s284_s23 }
  0x98   : > { %p2931_p11 = pnand %p3664_p3, %p2873_p0 }
  0x9a   : > { %p2308_p8 = pneg %p2931_p11 }
  0x9b   : > { %s3663_s5 = smov %s3662_s30  ;;  %s2925_s24 = scalar_lea.hbm %s3662_s30, %s1818_s13 }
  0x9c   : > { %s2306_s13 = scalar_lea.hbm %s2925_s24, 8192  ;;  %s2311_s3 = scalar_lea.hbm %s3663_s5, 16384 }
  0x9d   : > { %p2307_p5 = scmp.ne.s32.totalorder %s2925_s24, %s2306_s13  ;;  %p2312_p0 = scmp.lt.u32.totalorder %s2925_s24, %s3663_s5 }
  0x9e   : > { %p2313_p7 = scmp.lt.u32.totalorder %s2311_s3, %s2306_s13  ;;  %p2315_p1 = scmp.lt.u32.totalorder %s2306_s13, %s2925_s24 }
  0x9f   : > { %p2309_p13 = pnand %p2308_p8, %p2307_p5 }
  0xa0   : > { %p2314_p3 = por %p2313_p7, %p2312_p0 }
  0xa1   : > { %p2310_p2 = pneg %p2309_p13 }
  0xa2   : > { %p2316_p6 = por %p2315_p1, %p2314_p3 }
  0xa4   : > { %p2317_p10 = pnand %p2316_p6, %p2310_p2 }
  0xa6   : > { %2320 = shalt.err (!%p2317_p10)
}
  0xa7   : > { %s2321_s27 = scalar_lea.vmem %s2935_s23, 8192  ;;  %s2591_s0 = smov [#allocation4]  }
  0xa8   : > { %p2322_p5 = scmp.ne.s32.totalorder %s2935_s23, %s2321_s27  ;;  %s2326_s2 = sshll.u32 %s2591_s0, 4  ;;  %s2327_s2 = int_to_ptr.vmem [resolvable:$false] %s2326_s2 }
  0xa9   : > { %s2328_s9 = scalar_lea.vmem %s2327_s2, 16384  ;;  %p2329_p12 = scmp.lt.s32.totalorder %s2935_s23, %s2327_s2 }
  0xaa   : > { %p2324_p13 = pnand %p2322_p5, %p2308_p8  ;;  %p2330_p0 = scmp.lt.s32.totalorder %s2328_s9, %s2321_s27 }
  0xac   : > { %p2325_p4 = pneg %p2324_p13  ;;  %p2331_p7 = por %p2330_p0, %p2329_p12 }
  0xae   : > { %p2332_p1 = pnand %p2331_p7, %p2325_p4 }
  0xb0   : > { %2335 = shalt.err (!%p2332_p1)
}
  0xb1   : > { %s3666_s13 = sld [smem:[#allocation29_spill]]  ;;  %s3667_s3 = sld [smem:[#allocation39_spill]] }
  0xb2   : > { %1944 = dma.hbm_to_vmem [thread:$0]  (!%p2931_p11), %s2925_s24, 8192, %s2935_s23, %s2937_s12, %s3644_s20, %s3644_s20, %s3643_s6  }
  0xb7   : > { %s2972_s30 = scalar_lea.hbm %s3667_s3, %s2727_s19  ;;  %s320_s10 = scalar_lea.vmem [#allocation9], %s3666_s13 }
  0xb8   : > { %s328_s27 = sshll.u32 %s320_s10, 4  ;;  %s2336_s0 = scalar_lea.hbm %s2972_s30, 8192  ;;  %s2975_s27 = int_to_ptr.vmem [resolvable:$true] %s328_s27 }
  0xb9   : > { %p2337_p12 = scmp.ne.s32.totalorder %s2972_s30, %s2336_s0  ;;  %s2341_s12 = scalar_lea.hbm %s3667_s3, 24576 }
  0xba   : > { %p2342_p6 = scmp.lt.u32.totalorder %s2972_s30, %s3667_s3  ;;  %p2343_p11 = scmp.lt.u32.totalorder %s2341_s12, %s2336_s0 }
  0xbb   : > { %p2339_p4 = pnand %p2337_p12, %p2751_p9  ;;  %p2345_p2 = scmp.lt.u32.totalorder %s2336_s0, %s2972_s30 }
  0xbc   : > { %p2344_p8 = por %p2343_p11, %p2342_p6 }
  0xbd   : > { %p2340_p10 = pneg %p2339_p4 }
  0xbe   : > { %p2346_p3 = por %p2345_p2, %p2344_p8 }
  0xc0   : > { %p2347_p5 = pnand %p2346_p3, %p2340_p10 }
  0xc2   : > { %2350 = shalt.err (!%p2347_p5)
}
  0xc3   : > { %s2351_s9 = scalar_lea.vmem %s2975_s27, 8192  ;;  %s2592_s13 = smov [#allocation9]  }
  0xc4   : > { %p2352_p13 = scmp.ne.s32.totalorder %s2975_s27, %s2351_s9  ;;  %s2356_s11 = sshll.u32 %s2592_s13, 4  ;;  %s2357_s11 = int_to_ptr.vmem [resolvable:$false] %s2356_s11 }
  0xc5   : > { %s2358_s8 = scalar_lea.vmem %s2357_s11, 16384  ;;  %p2359_p1 = scmp.lt.s32.totalorder %s2975_s27, %s2357_s11 }
  0xc6   : > { %p2354_p0 = pnand %p2352_p13, %p2751_p9  ;;  %p2360_p12 = scmp.lt.s32.totalorder %s2358_s8, %s2351_s9 }
  0xc8   : > { %p2355_p7 = pneg %p2354_p0  ;;  %p2361_p4 = por %p2360_p12, %p2359_p1 }
  0xca   : > { %p2362_p6 = pnand %p2361_p4, %p2355_p7 }
  0xcc   : > { %2365 = shalt.err (!%p2362_p6)
}
  0xcd   : > { %p3668_p10 = scmp.ne.s32.totalorder %s3633_s7, 0  ;;  %s3669_s10 = scalar_lea.sflag [#allocation8], %s2719_s16 }
  0xce   : > { %s3670_s0 = sld [smem:[#allocation31_spill]]  ;;  %s3671_s12 = sld [smem:[#allocation41_spill]] }
  0xcf   : > { %1950 = dma.hbm_to_vmem [thread:$0]  (!%p3668_p10), %s2972_s30, 8192, %s2975_s27, %s3669_s10, %s3644_s20, %s3644_s20, %s3643_s6  }
  0xd4   : > { %s3672_s23 = smov %s3671_s12  ;;  %s3007_s19 = scalar_lea.hbm %s3671_s12, %s2801_s15 }
  0xd5   : > { %s364_s9 = scalar_lea.vmem [#allocation12], %s3670_s0  ;;  %s2366_s11 = scalar_lea.hbm %s3007_s19, 32 }
  0xd6   : > { %s372_s13 = sshll.u32 %s364_s9, 4  ;;  %p2367_p11 = scmp.ne.s32.totalorder %s3007_s19, %s2366_s11  ;;  %s373_s13 = int_to_ptr.vmem [resolvable:$true] %s372_s13 }
  0xd7   : > { %s2371_s6 = scalar_lea.hbm %s3672_s23, 96  ;;  %p2372_p3 = scmp.lt.u32.totalorder %s3007_s19, %s3672_s23 }
  0xd8   : > { %p2369_p8 = pnand %p2367_p11, %p2751_p9  ;;  %p2373_p5 = scmp.lt.u32.totalorder %s2371_s6, %s2366_s11 }
  0xd9   : > { %p2375_p0 = scmp.lt.u32.totalorder %s2366_s11, %s3007_s19 }
  0xda   : > { %p2370_p2 = pneg %p2369_p8  ;;  %p2374_p13 = por %p2373_p5, %p2372_p3 }
  0xdc   : > { %p2376_p7 = por %p2375_p0, %p2374_p13 }
  0xde   : > { %p2377_p1 = pnand %p2376_p7, %p2370_p2 }
  0xe0   : > { %2380 = shalt.err (!%p2377_p1)
}
  0xe1   : > { %s2381_s27 = scalar_lea.vmem %s373_s13, 32  ;;  %s2593_s10 = smov [#allocation12]  }
  0xe2   : > { %p2382_p12 = scmp.ne.s32.totalorder %s373_s13, %s2381_s27  ;;  %s2386_s2 = sshll.u32 %s2593_s10, 4  ;;  %s2387_s2 = int_to_ptr.vmem [resolvable:$false] %s2386_s2 }
  0xe3   : > { %s2388_s3 = scalar_lea.vmem %s2387_s2, 64  ;;  %p2389_p11 = scmp.lt.s32.totalorder %s373_s13, %s2387_s2 }
  0xe4   : > { %p2384_p4 = pnand %p2382_p12, %p2751_p9  ;;  %p2390_p8 = scmp.lt.s32.totalorder %s2388_s3, %s2381_s27 }
  0xe6   : > { %p2385_p6 = pneg %p2384_p4  ;;  %p2391_p10 = por %p2390_p8, %p2389_p11 }
  0xe8   : > { %p2392_p3 = pnand %p2391_p10, %p2385_p6 }
  0xea   : > { %2395 = shalt.err (!%p2392_p3)
}
  0xeb   : > { %p3673_p5 = scmp.ne.s32.totalorder %s3633_s7, 0  ;;  %s3674_s24 = scalar_lea.sflag [#allocation11], %s2719_s16 }
  0xec   : > { %s3675_s11 = sld [smem:[#allocation43_spill]]  ;;  %s402_s20 = scalar_lea.vmem [#allocation15], %s3670_s0 }
  0xed   : > { %1956 = dma.hbm_to_vmem [thread:$0]  (!%p3673_p5), %s3007_s19, 32, %s373_s13, %s3674_s24  }
  0xee   : > { %s410_s30 = sshll.u32 %s402_s20, 4  ;;  %s411_s30 = int_to_ptr.vmem [resolvable:$true] %s410_s30 }
  0xf2   : > { %s3676_s6 = smov %s3675_s11  ;;  %s3033_s8 = scalar_lea.hbm %s3675_s11, %s2801_s15 }
  0xf3   : > { %s2396_s27 = scalar_lea.hbm %s3033_s8, 32  ;;  %s2401_s19 = scalar_lea.hbm %s3676_s6, 96 }
  0xf4   : > { %p2397_p10 = scmp.ne.s32.totalorder %s3033_s8, %s2396_s27  ;;  %p2402_p0 = scmp.lt.u32.totalorder %s3033_s8, %s3676_s6 }
  0xf5   : > { %p2403_p7 = scmp.lt.u32.totalorder %s2401_s19, %s2396_s27  ;;  %p2405_p12 = scmp.lt.u32.totalorder %s2396_s27, %s3033_s8 }
  0xf6   : > { %p2399_p2 = pnand %p2397_p10, %p2751_p9 }
  0xf7   : > { %p2404_p1 = por %p2403_p7, %p2402_p0 }
  0xf8   : > { %p2400_p13 = pneg %p2399_p2 }
  0xf9   : > { %p2406_p4 = por %p2405_p12, %p2404_p1 }
  0xfb   : > { %p2407_p6 = pnand %p2406_p4, %p2400_p13 }
  0xfd   : > { %2410 = shalt.err (!%p2407_p6)
}
  0xfe   : > { %s2411_s15 = scalar_lea.vmem %s411_s30, 32  ;;  %s2594_s0 = smov [#allocation15]  }
  0xff   : > { %p2412_p11 = scmp.ne.s32.totalorder %s411_s30, %s2411_s15  ;;  %s2416_s24 = sshll.u32 %s2594_s0, 4  ;;  %s2417_s24 = int_to_ptr.vmem [resolvable:$false] %s2416_s24 }
 0x100   : > { %s2418_s12 = scalar_lea.vmem %s2417_s24, 64  ;;  %p2419_p10 = scmp.lt.s32.totalorder %s411_s30, %s2417_s24 }
 0x101   : > { %p2414_p8 = pnand %p2412_p11, %p2751_p9  ;;  %p2420_p2 = scmp.lt.s32.totalorder %s2418_s12, %s2411_s15 }
 0x103   : > { %p2415_p3 = pneg %p2414_p8  ;;  %p2421_p5 = por %p2420_p2, %p2419_p10 }
 0x105   : > { %p2422_p0 = pnand %p2421_p5, %p2415_p3 }
 0x107   : > { %2425 = shalt.err (!%p2422_p0)
}
 0x108   : > { %p3677_p7 = scmp.ne.s32.totalorder %s3633_s7, 0  ;;  %s3678_s9 = scalar_lea.sflag [#allocation14], %s2719_s16 }
 0x109   : > { %s3679_s11 = sld [smem:[#allocation30_spill]] }
 0x10a   : > { %1962 = dma.hbm_to_vmem [thread:$0]  (!%p3677_p7), %s3033_s8, 32, %s411_s30, %s3678_s9  }
 0x10f   : > { %p3680_p13 = scmp.ne.s32.totalorder %s3679_s11, 0 }
 0x110   : > { %s3681_s21 = sld [smem:[#allocation23_spill]] (!%p3680_p13)  ;;  %p3682_p9 = scmp.ne.s32.totalorder (!%p3680_p13), %s3654_s18, 0 }
 0x111   : > { %419 = sbr.rel (%p3680_p13) target bundleno = 810 (0x32a), region = 48 }
 0x116   : > { %s421_s20 = sand.u32 (!%p3680_p13), 1, %s3681_s21  }
 0x117   : > { %s1801_s27 = sshll.u32 (!%p3680_p13), %s421_s20, 9  ;;  %s422_s10 = scalar_lea.sflag (!%p3680_p13), [#allocation5], %s421_s20 }
 0x118   : > { %s3058_s2 = scalar_lea.vmem [#allocation4], %s1801_s27 }
 0x119   : > { %2511 = dma.done.wait (%p3682_p9), %s422_s10, 8192  }
 0x11a   : > { %2513 = vsyncadd (%p3682_p9), %s422_s10, 4294959104  ;;  %s3683_s7 = sld [smem:[#allocation35_spill]]  ;;  %s430_s16 = sand.u32 1, %s2858_s22  }
 0x11b   : > { %s432_s8 = sand.u32 1, %s2548_s28   ;;  %s431_s19 = scalar_lea.sflag [#allocation8], %s430_s16 }
 0x11c   : > { %s1802_s30 = sshll.u32 %s432_s8, 9 }
 0x11d   : > { %s3066_s13 = scalar_lea.vmem [#allocation7], %s1802_s30 }
 0x120   : > { %p3684_p5 = scmp.ne.s32.totalorder %s3683_s7, 0 }
 0x122   : > { %2515 = dma.done.wait (%p3684_p5), %s431_s19, 16384  }
 0x123   : > { %2517 = vsyncadd (%p3684_p5), %s431_s19, 4294950912  ;;  %s3072_s3 = scalar_lea.vmem [#allocation9], %s1802_s30  ;;  %s449_s15 = scalar_lea.sflag [#allocation11], %s430_s16 }
 0x124   : > { %s3074_s18 = scalar_lea.vmem [#allocation10], %s1802_s30 }
 0x125   : > { %2519 = dma.done.wait (%p3684_p5), %s449_s15, 8224  }
 0x126   : > { %2521 = vsyncadd (%p3684_p5), %s449_s15, 4294959072  ;;  %s3080_s22 = sshll.u32 %s432_s8, 1  ;;  %s467_s24 = scalar_lea.sflag [#allocation14], %s430_s16 }
 0x127   : > { %s461_s0 = scalar_lea.vmem [#allocation12], %s3080_s22  ;;  %s470_s12 = scalar_lea.vmem [#allocation13], %s3080_s22 }
 0x128   : > { %2523 = dma.done.wait (%p3684_p5), %s467_s24, 64  }
 0x129   : > { %2525 = vsyncadd (%p3684_p5), %s467_s24, 4294967232  ;;  %s537_s9 = sand.u32 1, %s2536_s25   ;;  %s479_s21 = scalar_lea.vmem [#allocation15], %s3080_s22 }
 0x12a   : > { %s1808_s11 = sshll.u32 %s537_s9, 9  ;;  %s3685_s27 = sld [smem:[#allocation25_spill]] }
 0x12b   : > { %s3092_s20 = scalar_lea.vmem [#allocation16], %s1808_s11 }
 0x130   : > { %p1809_p1 = scmp.ne.s32.totalorder %s3685_s27, 0 }
 0x131   : > { %v617_v0 = vld [vmem:[%s3072_s3] sm:$0xff] (!%p1809_p1)  ;;  %v618_v2 = vld [vmem:[%s3072_s3 + $0x8] sm:$0xff] (!%p1809_p1)  ;;  %v619_v4 = vld [vmem:[%s3072_s3 + $0x10] sm:$0xff] (!%p1809_p1) }
 0x132   : > { %552 = sbr.rel (%p1809_p1) target bundleno = 388 (0x184), region = 80  ;;  %v681_v1 = vmul.f32 (!%p1809_p1), 1.442695, %v617_v0  ;;  %v683_v3 = vmul.f32 (!%p1809_p1), 1.442695, %v618_v2  ;;  %v620_v6 = vld [vmem:[%s3072_s3 + $0x18] sm:$0xff] (!%p1809_p1) }
 0x133   : > { %v685_v5 = vmul.f32 (!%p1809_p1), 1.442695, %v619_v4  ;;  %v687_v7 = vmul.f32 (!%p1809_p1), 1.442695, %v620_v6  ;;  %v621_v8 = vld [vmem:[%s3072_s3 + $0x20] sm:$0xff] (!%p1809_p1)  ;;  %v622_v10 = vld [vmem:[%s3072_s3 + $0x28] sm:$0xff] (!%p1809_p1) }
 0x134   : > { %2086 = vpow2.f32 (!%p1809_p1), %v681_v1  ;;  %v689_v9 = vmul.f32 (!%p1809_p1), 1.442695, %v621_v8  ;;  %v691_v11 = vmul.f32 (!%p1809_p1), 1.442695, %v622_v10  ;;  %v623_v12 = vld [vmem:[%s3072_s3 + $0x30] sm:$0xff] (!%p1809_p1)  ;;  %v624_v14 = vld [vmem:[%s3072_s3 + $0x38] sm:$0xff] (!%p1809_p1) }
 0x135   : > { %2088 = vpow2.f32 (!%p1809_p1), %v683_v3  ;;  %v693_v13 = vmul.f32 (!%p1809_p1), 1.442695, %v623_v12  ;;  %v695_v15 = vmul.f32 (!%p1809_p1), 1.442695, %v624_v14  ;;  %v625_v16 = vld [vmem:[%s3072_s3 + $0x40] sm:$0xff] (!%p1809_p1)  ;;  %v626_v18 = vld [vmem:[%s3072_s3 + $0x48] sm:$0xff] (!%p1809_p1) }
 0x136   : > { %2090 = vpow2.f32 (!%p1809_p1), %v685_v5  ;;  %v697_v17 = vmul.f32 (!%p1809_p1), 1.442695, %v625_v16  ;;  %v699_v19 = vmul.f32 (!%p1809_p1), 1.442695, %v626_v18  ;;  %v627_v20 = vld [vmem:[%s3072_s3 + $0x50] sm:$0xff] (!%p1809_p1)  ;;  %v809_v21 = vld [vmem:[%s3074_s18] sm:$0xff] (!%p1809_p1) }
 0x137   : > { %2092 = vpow2.f32 (!%p1809_p1), %v687_v7  ;;  %v701_v22 = vmul.f32 (!%p1809_p1), 1.442695, %v627_v20  ;;  %v628_v23 = vld [vmem:[%s3072_s3 + $0x58] sm:$0xff] (!%p1809_p1)  ;;  %v810_v24 = vld [vmem:[%s3074_s18 + $0x8] sm:$0xff] (!%p1809_p1)  ;;  %v629_v26 = vld [vmem:[%s3072_s3 + $0x60] sm:$0xff] (!%p1809_p1) }
 0x138   : > { %2094 = vpow2.f32 (!%p1809_p1), %v689_v9  ;;  %v703_v25 = vmul.f32 (!%p1809_p1), 1.442695, %v628_v23  ;;  %v553_v28 = vld [vmem:[%s3066_s13] sm:$0xff] (!%p1809_p1)  ;;  %v811_v29 = vld [vmem:[%s3074_s18 + $0x10] sm:$0xff] (!%p1809_p1)  ;;  %v705_v30 = vmul.f32 (!%p1809_p1), 1.442695, %v629_v26 }
 0x139   : > { %2096 = vpow2.f32 %v691_v11  ;;  %v630_v31 = vld [vmem:[%s3072_s3 + $0x68] sm:$0xff]  ;;  %v812_v35 = vld [vmem:[%s3074_s18 + $0x18] sm:$0xff]  ;;  %v631_v37 = vld [vmem:[%s3072_s3 + $0x70] sm:$0xff] }
 0x13a   : > { %2098 = vpow2.f32 %v693_v13  ;;  %v554_v34 = vld [vmem:[%s3066_s13 + $0x8] sm:$0xff]  ;;  %v707_v36 = vmul.f32 1.442695, %v630_v31  ;;  %v555_v40 = vld [vmem:[%s3066_s13 + $0x10] sm:$0xff]  ;;  %v813_v41 = vld [vmem:[%s3074_s18 + $0x20] sm:$0xff] }
 0x13b   : > { %2100 = vpow2.f32 %v695_v15  ;;  %v709_v42 = vmul.f32 1.442695, %v631_v37  ;;  %v632_v43 = vld [vmem:[%s3072_s3 + $0x78] sm:$0xff]  ;;  %v814_v48 = vld [vmem:[%s3074_s18 + $0x28] sm:$0xff]  ;;  %v633_v50 = vld [vmem:[%s3072_s3 + $0x80] sm:$0xff] }
 0x13c   : > { %2102 = vpow2.f32 %v697_v17  ;;  %v556_v47 = vld [vmem:[%s3066_s13 + $0x18] sm:$0xff]  ;;  %v711_v49 = vmul.f32 1.442695, %v632_v43  ;;  %v557_v54 = vld [vmem:[%s3066_s13 + $0x20] sm:$0xff]  ;;  %v815_v55 = vld [vmem:[%s3074_s18 + $0x30] sm:$0xff] }
 0x13d   : > { %2104 = vpow2.f32 %v699_v19  ;;  %v713_v56 = vmul.f32 1.442695, %v633_v50  ;;  %v634_v57 = vld [vmem:[%s3072_s3 + $0x88] sm:$0xff]  ;;  %v816_v62 = vld [vmem:[%s3074_s18 + $0x38] sm:$0xff]  ;;  %v635_v0 = vld [vmem:[%s3072_s3 + $0x90] sm:$0xff] }
 0x13e   : > { %v2087_v27 = vpop.eup %2086  ;;  %2106 = vpow2.f32 %v701_v22  ;;  %v558_v61 = vld [vmem:[%s3066_s13 + $0x28] sm:$0xff]  ;;  %v715_v63 = vmul.f32 1.442695, %v634_v57  ;;  %v559_v4 = vld [vmem:[%s3066_s13 + $0x30] sm:$0xff]  ;;  %v817_v5 = vld [vmem:[%s3074_s18 + $0x40] sm:$0xff] }
 0x13f   : > { %v2089_v32 = vpop.eup %2088  ;;  %v873_v33 = vmul.f32 %v2087_v27, %v809_v21  ;;  %2108 = vpow2.f32 %v703_v25  ;;  %v717_v6 = vmul.f32 1.442695, %v635_v0  ;;  %v636_v7 = vld [vmem:[%s3072_s3 + $0x98] sm:$0xff]  ;;  %v818_v12 = vld [vmem:[%s3074_s18 + $0x48] sm:$0xff]  ;;  %v637_v14 = vld [vmem:[%s3072_s3 + $0xa0] sm:$0xff] }
 0x140   : > { %v2091_v38 = vpop.eup %2090  ;;  %v874_v39 = vmul.f32 %v2089_v32, %v810_v24  ;;  %2110 = vpow2.f32 %v705_v30  ;;  %v560_v11 = vld [vmem:[%s3066_s13 + $0x38] sm:$0xff]  ;;  %v719_v13 = vmul.f32 1.442695, %v636_v7  ;;  %v561_v18 = vld [vmem:[%s3066_s13 + $0x40] sm:$0xff]  ;;  %v819_v19 = vld [vmem:[%s3074_s18 + $0x50] sm:$0xff] }
 0x141   : > { %v2093_v44 = vpop.eup %2092  ;;  %v937_v45 = vadd.f32 %v873_v33, %v553_v28  ;;  %v875_v46 = vmul.f32 %v2091_v38, %v811_v29  ;;  %2112 = vpow2.f32 %v707_v36  ;;  %v721_v20 = vmul.f32 1.442695, %v637_v14  ;;  %v638_v21 = vld [vmem:[%s3072_s3 + $0xa8] sm:$0xff]  ;;  %v820_v26 = vld [vmem:[%s3074_s18 + $0x58] sm:$0xff]  ;;  %v639_v28 = vld [vmem:[%s3072_s3 + $0xb0] sm:$0xff] }
 0x142   : > { %v2095_v51 = vpop.eup %2094  ;;  %v938_v52 = vadd.f32 %v874_v39, %v554_v34  ;;  %v876_v53 = vmul.f32 %v2093_v44, %v812_v35  ;;  %2114 = vpow2.f32 %v709_v42  ;;  %v562_v25 = vld [vmem:[%s3066_s13 + $0x48] sm:$0xff]  ;;  %v723_v27 = vmul.f32 1.442695, %v638_v21  ;;  %v563_v32 = vld [vmem:[%s3066_s13 + $0x50] sm:$0xff]  ;;  %v821_v33 = vld [vmem:[%s3074_s18 + $0x60] sm:$0xff] }
 0x143   : > { %v2097_v58 = vpop.eup %2096  ;;  %1001 = vst [vmem:[#allocation2] sm:$0xff] %v937_v45  ;;  %v939_v59 = vadd.f32 %v875_v46, %v555_v40  ;;  %v877_v60 = vmul.f32 %v2095_v51, %v813_v41  ;;  %2116 = vpow2.f32 %v711_v49  ;;  %v725_v34 = vmul.f32 1.442695, %v639_v28  ;;  %v640_v35 = vld [vmem:[%s3072_s3 + $0xb8] sm:$0xff]  ;;  %v822_v40 = vld [vmem:[%s3074_s18 + $0x68] sm:$0xff]  ;;  %v641_v42 = vld [vmem:[%s3072_s3 + $0xc0] sm:$0xff] }
 0x144   : > { %v2099_v1 = vpop.eup %2098  ;;  %1002 = vst [vmem:[#allocation2 + $0x8] sm:$0xff] %v938_v52  ;;  %v940_v2 = vadd.f32 %v876_v53, %v556_v47  ;;  %v878_v3 = vmul.f32 %v2097_v58, %v814_v48  ;;  %2118 = vpow2.f32 %v713_v56  ;;  %v564_v39 = vld [vmem:[%s3066_s13 + $0x58] sm:$0xff]  ;;  %v727_v41 = vmul.f32 1.442695, %v640_v35  ;;  %v565_v46 = vld [vmem:[%s3066_s13 + $0x60] sm:$0xff]  ;;  %v823_v47 = vld [vmem:[%s3074_s18 + $0x70] sm:$0xff] }
 0x145   : > { %v2101_v8 = vpop.eup %2100  ;;  %1003 = vst [vmem:[#allocation2 + $0x10] sm:$0xff] %v939_v59  ;;  %v941_v9 = vadd.f32 %v877_v60, %v557_v54  ;;  %v879_v10 = vmul.f32 %v2099_v1, %v815_v55  ;;  %2120 = vpow2.f32 %v715_v63  ;;  %v729_v48 = vmul.f32 1.442695, %v641_v42  ;;  %v642_v49 = vld [vmem:[%s3072_s3 + $0xc8] sm:$0xff]  ;;  %v824_v54 = vld [vmem:[%s3074_s18 + $0x78] sm:$0xff]  ;;  %v643_v56 = vld [vmem:[%s3072_s3 + $0xd0] sm:$0xff] }
 0x146   : > { %v2103_v15 = vpop.eup %2102  ;;  %1004 = vst [vmem:[#allocation2 + $0x18] sm:$0xff] %v940_v2  ;;  %v942_v16 = vadd.f32 %v878_v3, %v558_v61  ;;  %v880_v17 = vmul.f32 %v2101_v8, %v816_v62  ;;  %2122 = vpow2.f32 %v717_v6  ;;  %v566_v53 = vld [vmem:[%s3066_s13 + $0x68] sm:$0xff]  ;;  %v731_v55 = vmul.f32 1.442695, %v642_v49  ;;  %v567_v60 = vld [vmem:[%s3066_s13 + $0x70] sm:$0xff]  ;;  %v825_v61 = vld [vmem:[%s3074_s18 + $0x80] sm:$0xff] }
 0x147   : > { %v2105_v22 = vpop.eup %2104  ;;  %1005 = vst [vmem:[#allocation2 + $0x20] sm:$0xff] %v941_v9  ;;  %v943_v23 = vadd.f32 %v879_v10, %v559_v4  ;;  %v881_v24 = vmul.f32 %v2103_v15, %v817_v5  ;;  %2124 = vpow2.f32 %v719_v13  ;;  %v733_v62 = vmul.f32 1.442695, %v643_v56  ;;  %v644_v63 = vld [vmem:[%s3072_s3 + $0xd8] sm:$0xff]  ;;  %v826_v4 = vld [vmem:[%s3074_s18 + $0x88] sm:$0xff]  ;;  %v645_v6 = vld [vmem:[%s3072_s3 + $0xe0] sm:$0xff] }
 0x148   : > { %v2107_v29 = vpop.eup %2106  ;;  %1006 = vst [vmem:[#allocation2 + $0x28] sm:$0xff] %v942_v16  ;;  %v944_v30 = vadd.f32 %v880_v17, %v560_v11  ;;  %v882_v31 = vmul.f32 %v2105_v22, %v818_v12  ;;  %2126 = vpow2.f32 %v721_v20  ;;  %v568_v3 = vld [vmem:[%s3066_s13 + $0x78] sm:$0xff]  ;;  %v735_v5 = vmul.f32 1.442695, %v644_v63  ;;  %v569_v10 = vld [vmem:[%s3066_s13 + $0x80] sm:$0xff]  ;;  %v827_v11 = vld [vmem:[%s3074_s18 + $0x90] sm:$0xff] }
 0x149   : > { %v2109_v36 = vpop.eup %2108  ;;  %1007 = vst [vmem:[#allocation2 + $0x30] sm:$0xff] %v943_v23  ;;  %v945_v37 = vadd.f32 %v881_v24, %v561_v18  ;;  %v883_v38 = vmul.f32 %v2107_v29, %v819_v19  ;;  %2128 = vpow2.f32 %v723_v27  ;;  %v737_v12 = vmul.f32 1.442695, %v645_v6  ;;  %v646_v13 = vld [vmem:[%s3072_s3 + $0xe8] sm:$0xff]  ;;  %v828_v18 = vld [vmem:[%s3074_s18 + $0x98] sm:$0xff]  ;;  %v647_v20 = vld [vmem:[%s3072_s3 + $0xf0] sm:$0xff] }
 0x14a   : > { %v2111_v43 = vpop.eup %2110  ;;  %1008 = vst [vmem:[#allocation2 + $0x38] sm:$0xff] %v944_v30  ;;  %v946_v44 = vadd.f32 %v882_v31, %v562_v25  ;;  %v884_v45 = vmul.f32 %v2109_v36, %v820_v26  ;;  %2130 = vpow2.f32 %v725_v34  ;;  %v570_v17 = vld [vmem:[%s3066_s13 + $0x88] sm:$0xff]  ;;  %v739_v19 = vmul.f32 1.442695, %v646_v13  ;;  %v571_v24 = vld [vmem:[%s3066_s13 + $0x90] sm:$0xff]  ;;  %v829_v25 = vld [vmem:[%s3074_s18 + $0xa0] sm:$0xff] }
 0x14b   : > { %v2113_v50 = vpop.eup %2112  ;;  %1009 = vst [vmem:[#allocation2 + $0x40] sm:$0xff] %v945_v37  ;;  %v947_v51 = vadd.f32 %v883_v38, %v563_v32  ;;  %v885_v52 = vmul.f32 %v2111_v43, %v821_v33  ;;  %2132 = vpow2.f32 %v727_v41  ;;  %v741_v26 = vmul.f32 1.442695, %v647_v20  ;;  %v648_v27 = vld [vmem:[%s3072_s3 + $0xf8] sm:$0xff]  ;;  %v830_v32 = vld [vmem:[%s3074_s18 + $0xa8] sm:$0xff]  ;;  %v649_v34 = vld [vmem:[%s3072_s3 + $0x100] sm:$0xff] }
 0x14c   : > { %v2115_v57 = vpop.eup %2114  ;;  %1010 = vst [vmem:[#allocation2 + $0x48] sm:$0xff] %v946_v44  ;;  %v948_v58 = vadd.f32 %v884_v45, %v564_v39  ;;  %v886_v59 = vmul.f32 %v2113_v50, %v822_v40  ;;  %2134 = vpow2.f32 %v729_v48  ;;  %v572_v31 = vld [vmem:[%s3066_s13 + $0x98] sm:$0xff]  ;;  %v743_v33 = vmul.f32 1.442695, %v648_v27  ;;  %v573_v38 = vld [vmem:[%s3066_s13 + $0xa0] sm:$0xff]  ;;  %v831_v39 = vld [vmem:[%s3074_s18 + $0xb0] sm:$0xff] }
 0x14d   : > { %v2117_v0 = vpop.eup %2116  ;;  %1011 = vst [vmem:[#allocation2 + $0x50] sm:$0xff] %v947_v51  ;;  %v949_v1 = vadd.f32 %v885_v52, %v565_v46  ;;  %v887_v2 = vmul.f32 %v2115_v57, %v823_v47  ;;  %2136 = vpow2.f32 %v731_v55  ;;  %v745_v40 = vmul.f32 1.442695, %v649_v34  ;;  %v650_v41 = vld [vmem:[%s3072_s3 + $0x108] sm:$0xff]  ;;  %v832_v46 = vld [vmem:[%s3074_s18 + $0xb8] sm:$0xff]  ;;  %v651_v48 = vld [vmem:[%s3072_s3 + $0x110] sm:$0xff] }
 0x14e   : > { %v2119_v7 = vpop.eup %2118  ;;  %1012 = vst [vmem:[#allocation2 + $0x58] sm:$0xff] %v948_v58  ;;  %v950_v8 = vadd.f32 %v886_v59, %v566_v53  ;;  %v888_v9 = vmul.f32 %v2117_v0, %v824_v54  ;;  %2138 = vpow2.f32 %v733_v62  ;;  %v574_v45 = vld [vmem:[%s3066_s13 + $0xa8] sm:$0xff]  ;;  %v747_v47 = vmul.f32 1.442695, %v650_v41  ;;  %v575_v52 = vld [vmem:[%s3066_s13 + $0xb0] sm:$0xff]  ;;  %v833_v53 = vld [vmem:[%s3074_s18 + $0xc0] sm:$0xff] }
 0x14f   : > { %v2121_v14 = vpop.eup %2120  ;;  %1013 = vst [vmem:[#allocation2 + $0x60] sm:$0xff] %v949_v1  ;;  %v951_v15 = vadd.f32 %v887_v2, %v567_v60  ;;  %v889_v16 = vmul.f32 %v2119_v7, %v825_v61  ;;  %2140 = vpow2.f32 %v735_v5  ;;  %v749_v54 = vmul.f32 1.442695, %v651_v48  ;;  %v652_v55 = vld [vmem:[%s3072_s3 + $0x118] sm:$0xff]  ;;  %v834_v60 = vld [vmem:[%s3074_s18 + $0xc8] sm:$0xff]  ;;  %v653_v62 = vld [vmem:[%s3072_s3 + $0x120] sm:$0xff] }
 0x150   : > { %v2123_v21 = vpop.eup %2122  ;;  %1014 = vst [vmem:[#allocation2 + $0x68] sm:$0xff] %v950_v8  ;;  %v952_v22 = vadd.f32 %v888_v9, %v568_v3  ;;  %v890_v23 = vmul.f32 %v2121_v14, %v826_v4  ;;  %2142 = vpow2.f32 %v737_v12  ;;  %v576_v59 = vld [vmem:[%s3066_s13 + $0xb8] sm:$0xff]  ;;  %v751_v61 = vmul.f32 1.442695, %v652_v55  ;;  %v577_v2 = vld [vmem:[%s3066_s13 + $0xc0] sm:$0xff]  ;;  %v835_v3 = vld [vmem:[%s3074_s18 + $0xd0] sm:$0xff] }
 0x151   : > { %v2125_v28 = vpop.eup %2124  ;;  %1015 = vst [vmem:[#allocation2 + $0x70] sm:$0xff] %v951_v15  ;;  %v953_v29 = vadd.f32 %v889_v16, %v569_v10  ;;  %v891_v30 = vmul.f32 %v2123_v21, %v827_v11  ;;  %2144 = vpow2.f32 %v739_v19  ;;  %v753_v4 = vmul.f32 1.442695, %v653_v62  ;;  %v654_v5 = vld [vmem:[%s3072_s3 + $0x128] sm:$0xff]  ;;  %v836_v10 = vld [vmem:[%s3074_s18 + $0xd8] sm:$0xff]  ;;  %v655_v12 = vld [vmem:[%s3072_s3 + $0x130] sm:$0xff] }
 0x152   : > { %v2127_v35 = vpop.eup %2126  ;;  %1016 = vst [vmem:[#allocation2 + $0x78] sm:$0xff] %v952_v22  ;;  %v954_v36 = vadd.f32 %v890_v23, %v570_v17  ;;  %v892_v37 = vmul.f32 %v2125_v28, %v828_v18  ;;  %2146 = vpow2.f32 %v741_v26  ;;  %v578_v9 = vld [vmem:[%s3066_s13 + $0xc8] sm:$0xff]  ;;  %v755_v11 = vmul.f32 1.442695, %v654_v5  ;;  %v579_v16 = vld [vmem:[%s3066_s13 + $0xd0] sm:$0xff]  ;;  %v837_v17 = vld [vmem:[%s3074_s18 + $0xe0] sm:$0xff] }
 0x153   : > { %v2129_v42 = vpop.eup %2128  ;;  %1017 = vst [vmem:[#allocation2 + $0x80] sm:$0xff] %v953_v29  ;;  %v955_v43 = vadd.f32 %v891_v30, %v571_v24  ;;  %v893_v44 = vmul.f32 %v2127_v35, %v829_v25  ;;  %2148 = vpow2.f32 %v743_v33  ;;  %v757_v18 = vmul.f32 1.442695, %v655_v12  ;;  %v656_v19 = vld [vmem:[%s3072_s3 + $0x138] sm:$0xff]  ;;  %v838_v24 = vld [vmem:[%s3074_s18 + $0xe8] sm:$0xff]  ;;  %v657_v26 = vld [vmem:[%s3072_s3 + $0x140] sm:$0xff] }
 0x154   : > { %v2131_v49 = vpop.eup %2130  ;;  %1018 = vst [vmem:[#allocation2 + $0x88] sm:$0xff] %v954_v36  ;;  %v956_v50 = vadd.f32 %v892_v37, %v572_v31  ;;  %v894_v51 = vmul.f32 %v2129_v42, %v830_v32  ;;  %2150 = vpow2.f32 %v745_v40  ;;  %v580_v23 = vld [vmem:[%s3066_s13 + $0xd8] sm:$0xff]  ;;  %v759_v25 = vmul.f32 1.442695, %v656_v19  ;;  %v581_v30 = vld [vmem:[%s3066_s13 + $0xe0] sm:$0xff]  ;;  %v839_v31 = vld [vmem:[%s3074_s18 + $0xf0] sm:$0xff] }
 0x155   : > { %v2133_v56 = vpop.eup %2132  ;;  %1019 = vst [vmem:[#allocation2 + $0x90] sm:$0xff] %v955_v43  ;;  %v957_v57 = vadd.f32 %v893_v44, %v573_v38  ;;  %v895_v58 = vmul.f32 %v2131_v49, %v831_v39  ;;  %2152 = vpow2.f32 %v747_v47  ;;  %v761_v32 = vmul.f32 1.442695, %v657_v26  ;;  %v658_v33 = vld [vmem:[%s3072_s3 + $0x148] sm:$0xff]  ;;  %v840_v38 = vld [vmem:[%s3074_s18 + $0xf8] sm:$0xff]  ;;  %v659_v40 = vld [vmem:[%s3072_s3 + $0x150] sm:$0xff] }
 0x156   : > { %v2135_v63 = vpop.eup %2134  ;;  %1020 = vst [vmem:[#allocation2 + $0x98] sm:$0xff] %v956_v50  ;;  %v958_v0 = vadd.f32 %v894_v51, %v574_v45  ;;  %v896_v1 = vmul.f32 %v2133_v56, %v832_v46  ;;  %2154 = vpow2.f32 %v749_v54  ;;  %v582_v37 = vld [vmem:[%s3066_s13 + $0xe8] sm:$0xff]  ;;  %v763_v39 = vmul.f32 1.442695, %v658_v33  ;;  %v583_v44 = vld [vmem:[%s3066_s13 + $0xf0] sm:$0xff]  ;;  %v841_v45 = vld [vmem:[%s3074_s18 + $0x100] sm:$0xff] }
 0x157   : > { %v2137_v6 = vpop.eup %2136  ;;  %1021 = vst [vmem:[#allocation2 + $0xa0] sm:$0xff] %v957_v57  ;;  %v959_v7 = vadd.f32 %v895_v58, %v575_v52  ;;  %v897_v8 = vmul.f32 %v2135_v63, %v833_v53  ;;  %2156 = vpow2.f32 %v751_v61  ;;  %v765_v46 = vmul.f32 1.442695, %v659_v40  ;;  %v660_v47 = vld [vmem:[%s3072_s3 + $0x158] sm:$0xff]  ;;  %v842_v52 = vld [vmem:[%s3074_s18 + $0x108] sm:$0xff]  ;;  %v661_v54 = vld [vmem:[%s3072_s3 + $0x160] sm:$0xff] }
 0x158   : > { %v2139_v13 = vpop.eup %2138  ;;  %1022 = vst [vmem:[#allocation2 + $0xa8] sm:$0xff] %v958_v0  ;;  %v960_v14 = vadd.f32 %v896_v1, %v576_v59  ;;  %v898_v15 = vmul.f32 %v2137_v6, %v834_v60  ;;  %2158 = vpow2.f32 %v753_v4  ;;  %v584_v51 = vld [vmem:[%s3066_s13 + $0xf8] sm:$0xff]  ;;  %v767_v53 = vmul.f32 1.442695, %v660_v47  ;;  %v585_v58 = vld [vmem:[%s3066_s13 + $0x100] sm:$0xff]  ;;  %v843_v59 = vld [vmem:[%s3074_s18 + $0x110] sm:$0xff] }
 0x159   : > { %v2141_v20 = vpop.eup %2140  ;;  %1023 = vst [vmem:[#allocation2 + $0xb0] sm:$0xff] %v959_v7  ;;  %v961_v21 = vadd.f32 %v897_v8, %v577_v2  ;;  %v899_v22 = vmul.f32 %v2139_v13, %v835_v3  ;;  %2160 = vpow2.f32 %v755_v11  ;;  %v769_v60 = vmul.f32 1.442695, %v661_v54  ;;  %v662_v61 = vld [vmem:[%s3072_s3 + $0x168] sm:$0xff]  ;;  %v844_v2 = vld [vmem:[%s3074_s18 + $0x118] sm:$0xff]  ;;  %v663_v4 = vld [vmem:[%s3072_s3 + $0x170] sm:$0xff] }
 0x15a   : > { %v2143_v27 = vpop.eup %2142  ;;  %1024 = vst [vmem:[#allocation2 + $0xb8] sm:$0xff] %v960_v14  ;;  %v962_v28 = vadd.f32 %v898_v15, %v578_v9  ;;  %v900_v29 = vmul.f32 %v2141_v20, %v836_v10  ;;  %2162 = vpow2.f32 %v757_v18  ;;  %v586_v1 = vld [vmem:[%s3066_s13 + $0x108] sm:$0xff]  ;;  %v771_v3 = vmul.f32 1.442695, %v662_v61  ;;  %v587_v8 = vld [vmem:[%s3066_s13 + $0x110] sm:$0xff]  ;;  %v845_v9 = vld [vmem:[%s3074_s18 + $0x120] sm:$0xff] }
 0x15b   : > { %v2145_v34 = vpop.eup %2144  ;;  %1025 = vst [vmem:[#allocation2 + $0xc0] sm:$0xff] %v961_v21  ;;  %v963_v35 = vadd.f32 %v899_v22, %v579_v16  ;;  %v901_v36 = vmul.f32 %v2143_v27, %v837_v17  ;;  %2164 = vpow2.f32 %v759_v25  ;;  %v773_v10 = vmul.f32 1.442695, %v663_v4  ;;  %v664_v11 = vld [vmem:[%s3072_s3 + $0x178] sm:$0xff]  ;;  %v846_v16 = vld [vmem:[%s3074_s18 + $0x128] sm:$0xff]  ;;  %v665_v18 = vld [vmem:[%s3072_s3 + $0x180] sm:$0xff] }
 0x15c   : > { %v2147_v41 = vpop.eup %2146  ;;  %1026 = vst [vmem:[#allocation2 + $0xc8] sm:$0xff] %v962_v28  ;;  %v964_v42 = vadd.f32 %v900_v29, %v580_v23  ;;  %v902_v43 = vmul.f32 %v2145_v34, %v838_v24  ;;  %2166 = vpow2.f32 %v761_v32  ;;  %v588_v15 = vld [vmem:[%s3066_s13 + $0x118] sm:$0xff]  ;;  %v775_v17 = vmul.f32 1.442695, %v664_v11  ;;  %v589_v22 = vld [vmem:[%s3066_s13 + $0x120] sm:$0xff]  ;;  %v847_v23 = vld [vmem:[%s3074_s18 + $0x130] sm:$0xff] }
 0x15d   : > { %v2149_v48 = vpop.eup %2148  ;;  %1027 = vst [vmem:[#allocation2 + $0xd0] sm:$0xff] %v963_v35  ;;  %v965_v49 = vadd.f32 %v901_v36, %v581_v30  ;;  %v903_v50 = vmul.f32 %v2147_v41, %v839_v31  ;;  %2168 = vpow2.f32 %v763_v39  ;;  %v777_v24 = vmul.f32 1.442695, %v665_v18  ;;  %v666_v25 = vld [vmem:[%s3072_s3 + $0x188] sm:$0xff]  ;;  %v848_v30 = vld [vmem:[%s3074_s18 + $0x138] sm:$0xff]  ;;  %v667_v32 = vld [vmem:[%s3072_s3 + $0x190] sm:$0xff] }
 0x15e   : > { %v2151_v55 = vpop.eup %2150  ;;  %1028 = vst [vmem:[#allocation2 + $0xd8] sm:$0xff] %v964_v42  ;;  %v966_v56 = vadd.f32 %v902_v43, %v582_v37  ;;  %v904_v57 = vmul.f32 %v2149_v48, %v840_v38  ;;  %2170 = vpow2.f32 %v765_v46  ;;  %v590_v29 = vld [vmem:[%s3066_s13 + $0x128] sm:$0xff]  ;;  %v779_v31 = vmul.f32 1.442695, %v666_v25  ;;  %v591_v36 = vld [vmem:[%s3066_s13 + $0x130] sm:$0xff]  ;;  %v849_v37 = vld [vmem:[%s3074_s18 + $0x140] sm:$0xff] }
 0x15f   : > { %v2153_v62 = vpop.eup %2152  ;;  %1029 = vst [vmem:[#allocation2 + $0xe0] sm:$0xff] %v965_v49  ;;  %v967_v63 = vadd.f32 %v903_v50, %v583_v44  ;;  %v905_v0 = vmul.f32 %v2151_v55, %v841_v45  ;;  %2172 = vpow2.f32 %v767_v53  ;;  %v781_v38 = vmul.f32 1.442695, %v667_v32  ;;  %v668_v39 = vld [vmem:[%s3072_s3 + $0x198] sm:$0xff]  ;;  %v850_v44 = vld [vmem:[%s3074_s18 + $0x148] sm:$0xff]  ;;  %v669_v46 = vld [vmem:[%s3072_s3 + $0x1a0] sm:$0xff] }
 0x160   : > { %v2155_v5 = vpop.eup %2154  ;;  %1030 = vst [vmem:[#allocation2 + $0xe8] sm:$0xff] %v966_v56  ;;  %v968_v6 = vadd.f32 %v904_v57, %v584_v51  ;;  %v906_v7 = vmul.f32 %v2153_v62, %v842_v52  ;;  %2174 = vpow2.f32 %v769_v60  ;;  %v592_v43 = vld [vmem:[%s3066_s13 + $0x138] sm:$0xff]  ;;  %v783_v45 = vmul.f32 1.442695, %v668_v39  ;;  %v593_v50 = vld [vmem:[%s3066_s13 + $0x140] sm:$0xff]  ;;  %v851_v51 = vld [vmem:[%s3074_s18 + $0x150] sm:$0xff] }
 0x161   : > { %v2157_v12 = vpop.eup %2156  ;;  %1031 = vst [vmem:[#allocation2 + $0xf0] sm:$0xff] %v967_v63  ;;  %v969_v13 = vadd.f32 %v905_v0, %v585_v58  ;;  %v907_v14 = vmul.f32 %v2155_v5, %v843_v59  ;;  %2176 = vpow2.f32 %v771_v3  ;;  %v785_v52 = vmul.f32 1.442695, %v669_v46  ;;  %v670_v53 = vld [vmem:[%s3072_s3 + $0x1a8] sm:$0xff]  ;;  %v852_v58 = vld [vmem:[%s3074_s18 + $0x158] sm:$0xff]  ;;  %v671_v60 = vld [vmem:[%s3072_s3 + $0x1b0] sm:$0xff] }
 0x162   : > { %v2159_v19 = vpop.eup %2158  ;;  %1032 = vst [vmem:[#allocation2 + $0xf8] sm:$0xff] %v968_v6  ;;  %v970_v20 = vadd.f32 %v906_v7, %v586_v1  ;;  %v908_v21 = vmul.f32 %v2157_v12, %v844_v2  ;;  %2178 = vpow2.f32 %v773_v10  ;;  %v594_v57 = vld [vmem:[%s3066_s13 + $0x148] sm:$0xff]  ;;  %v787_v59 = vmul.f32 1.442695, %v670_v53  ;;  %v595_v0 = vld [vmem:[%s3066_s13 + $0x150] sm:$0xff]  ;;  %v853_v1 = vld [vmem:[%s3074_s18 + $0x160] sm:$0xff] }
 0x163   : > { %v2161_v26 = vpop.eup %2160  ;;  %1033 = vst [vmem:[#allocation2 + $0x100] sm:$0xff] %v969_v13  ;;  %v971_v27 = vadd.f32 %v907_v14, %v587_v8  ;;  %v909_v28 = vmul.f32 %v2159_v19, %v845_v9  ;;  %2180 = vpow2.f32 %v775_v17  ;;  %v789_v2 = vmul.f32 1.442695, %v671_v60  ;;  %v672_v3 = vld [vmem:[%s3072_s3 + $0x1b8] sm:$0xff]  ;;  %v854_v8 = vld [vmem:[%s3074_s18 + $0x168] sm:$0xff]  ;;  %v673_v10 = vld [vmem:[%s3072_s3 + $0x1c0] sm:$0xff] }
 0x164   : > { %v2163_v33 = vpop.eup %2162  ;;  %1034 = vst [vmem:[#allocation2 + $0x108] sm:$0xff] %v970_v20  ;;  %v972_v34 = vadd.f32 %v908_v21, %v588_v15  ;;  %v910_v35 = vmul.f32 %v2161_v26, %v846_v16  ;;  %2182 = vpow2.f32 %v777_v24  ;;  %v596_v7 = vld [vmem:[%s3066_s13 + $0x158] sm:$0xff]  ;;  %v791_v9 = vmul.f32 1.442695, %v672_v3  ;;  %v597_v14 = vld [vmem:[%s3066_s13 + $0x160] sm:$0xff]  ;;  %v855_v15 = vld [vmem:[%s3074_s18 + $0x170] sm:$0xff] }
 0x165   : > { %v2165_v40 = vpop.eup %2164  ;;  %1035 = vst [vmem:[#allocation2 + $0x110] sm:$0xff] %v971_v27  ;;  %v973_v41 = vadd.f32 %v909_v28, %v589_v22  ;;  %v911_v42 = vmul.f32 %v2163_v33, %v847_v23  ;;  %2184 = vpow2.f32 %v779_v31  ;;  %v793_v16 = vmul.f32 1.442695, %v673_v10  ;;  %v674_v17 = vld [vmem:[%s3072_s3 + $0x1c8] sm:$0xff]  ;;  %v856_v22 = vld [vmem:[%s3074_s18 + $0x178] sm:$0xff]  ;;  %v675_v24 = vld [vmem:[%s3072_s3 + $0x1d0] sm:$0xff] }
 0x166   : > { %v2167_v47 = vpop.eup %2166  ;;  %1036 = vst [vmem:[#allocation2 + $0x118] sm:$0xff] %v972_v34  ;;  %v974_v48 = vadd.f32 %v910_v35, %v590_v29  ;;  %v912_v49 = vmul.f32 %v2165_v40, %v848_v30  ;;  %2186 = vpow2.f32 %v781_v38  ;;  %v598_v21 = vld [vmem:[%s3066_s13 + $0x168] sm:$0xff]  ;;  %v795_v23 = vmul.f32 1.442695, %v674_v17  ;;  %v599_v28 = vld [vmem:[%s3066_s13 + $0x170] sm:$0xff]  ;;  %v857_v29 = vld [vmem:[%s3074_s18 + $0x180] sm:$0xff] }
 0x167   : > { %v2169_v54 = vpop.eup %2168  ;;  %1037 = vst [vmem:[#allocation2 + $0x120] sm:$0xff] %v973_v41  ;;  %v975_v55 = vadd.f32 %v911_v42, %v591_v36  ;;  %v913_v56 = vmul.f32 %v2167_v47, %v849_v37  ;;  %2188 = vpow2.f32 %v783_v45  ;;  %v797_v30 = vmul.f32 1.442695, %v675_v24  ;;  %v676_v31 = vld [vmem:[%s3072_s3 + $0x1d8] sm:$0xff]  ;;  %v858_v36 = vld [vmem:[%s3074_s18 + $0x188] sm:$0xff]  ;;  %v677_v38 = vld [vmem:[%s3072_s3 + $0x1e0] sm:$0xff] }
 0x168   : > { %v2171_v61 = vpop.eup %2170  ;;  %1038 = vst [vmem:[#allocation2 + $0x128] sm:$0xff] %v974_v48  ;;  %v976_v62 = vadd.f32 %v912_v49, %v592_v43  ;;  %v914_v63 = vmul.f32 %v2169_v54, %v850_v44  ;;  %2190 = vpow2.f32 %v785_v52  ;;  %v600_v35 = vld [vmem:[%s3066_s13 + $0x178] sm:$0xff]  ;;  %v799_v37 = vmul.f32 1.442695, %v676_v31  ;;  %v601_v42 = vld [vmem:[%s3066_s13 + $0x180] sm:$0xff]  ;;  %v859_v43 = vld [vmem:[%s3074_s18 + $0x190] sm:$0xff] }
 0x169   : > { %v2173_v4 = vpop.eup %2172  ;;  %1039 = vst [vmem:[#allocation2 + $0x130] sm:$0xff] %v975_v55  ;;  %v977_v5 = vadd.f32 %v913_v56, %v593_v50  ;;  %v915_v6 = vmul.f32 %v2171_v61, %v851_v51  ;;  %2192 = vpow2.f32 %v787_v59  ;;  %v801_v44 = vmul.f32 1.442695, %v677_v38  ;;  %v678_v45 = vld [vmem:[%s3072_s3 + $0x1e8] sm:$0xff]  ;;  %v860_v50 = vld [vmem:[%s3074_s18 + $0x198] sm:$0xff]  ;;  %v679_v52 = vld [vmem:[%s3072_s3 + $0x1f0] sm:$0xff] }
 0x16a   : > { %v2175_v11 = vpop.eup %2174  ;;  %1040 = vst [vmem:[#allocation2 + $0x138] sm:$0xff] %v976_v62  ;;  %v978_v12 = vadd.f32 %v914_v63, %v594_v57  ;;  %v916_v13 = vmul.f32 %v2173_v4, %v852_v58  ;;  %2194 = vpow2.f32 %v789_v2  ;;  %v602_v49 = vld [vmem:[%s3066_s13 + $0x188] sm:$0xff]  ;;  %v803_v51 = vmul.f32 1.442695, %v678_v45  ;;  %v603_v56 = vld [vmem:[%s3066_s13 + $0x190] sm:$0xff]  ;;  %v861_v57 = vld [vmem:[%s3074_s18 + $0x1a0] sm:$0xff] }
 0x16b   : > { %v2177_v18 = vpop.eup %2176  ;;  %1041 = vst [vmem:[#allocation2 + $0x140] sm:$0xff] %v977_v5  ;;  %v979_v19 = vadd.f32 %v915_v6, %v595_v0  ;;  %v917_v20 = vmul.f32 %v2175_v11, %v853_v1  ;;  %2196 = vpow2.f32 %v791_v9  ;;  %v805_v58 = vmul.f32 1.442695, %v679_v52  ;;  %v680_v59 = vld [vmem:[%s3072_s3 + $0x1f8] sm:$0xff]  ;;  %v862_v0 = vld [vmem:[%s3074_s18 + $0x1a8] sm:$0xff]  ;;  %v605_v6 = vld [vmem:[%s3066_s13 + $0x1a0] sm:$0xff] }
 0x16c   : > { %v2179_v25 = vpop.eup %2178  ;;  %1042 = vst [vmem:[#allocation2 + $0x148] sm:$0xff] %v978_v12  ;;  %v980_v26 = vadd.f32 %v916_v13, %v596_v7  ;;  %v918_v27 = vmul.f32 %v2177_v18, %v854_v8  ;;  %2198 = vpow2.f32 %v793_v16  ;;  %v604_v63 = vld [vmem:[%s3066_s13 + $0x198] sm:$0xff]  ;;  %v807_v1 = vmul.f32 1.442695, %v680_v59  ;;  %v1066_v2 = vld [vmem:[%s470_s12] sm:$0x3] }
 0x16d   : > { %v2181_v32 = vpop.eup %2180  ;;  %1043 = vst [vmem:[#allocation2 + $0x150] sm:$0xff] %v979_v19  ;;  %v981_v33 = vadd.f32 %v917_v20, %v597_v14  ;;  %v919_v34 = vmul.f32 %v2179_v25, %v855_v15  ;;  %2200 = vpow2.f32 %v795_v23  ;;  %v863_v7 = vld [vmem:[%s3074_s18 + $0x1b0] sm:$0xff]  ;;  %v1067_v8 = vmul.f32 1.442695, %v1066_v2  ;;  %v606_v12 = vld [vmem:[%s3066_s13 + $0x1a8] sm:$0xff]  ;;  %v864_v13 = vld [vmem:[%s3074_s18 + $0x1b8] sm:$0xff] }
 0x16e   : > { %v2183_v39 = vpop.eup %2182  ;;  %1044 = vst [vmem:[#allocation2 + $0x158] sm:$0xff] %v980_v26  ;;  %v982_v40 = vadd.f32 %v918_v27, %v598_v21  ;;  %v920_v41 = vmul.f32 %v2181_v32, %v856_v22  ;;  %2202 = vpow2.f32 %v797_v30  ;;  %v607_v17 = vld [vmem:[%s3066_s13 + $0x1b0] sm:$0xff]  ;;  %v865_v18 = vld [vmem:[%s3074_s18 + $0x1c0] sm:$0xff]  ;;  %v608_v22 = vld [vmem:[%s3066_s13 + $0x1b8] sm:$0xff]  ;;  %v1072_v59 = vlaneseq }
 0x16f   : > { %v2185_v46 = vpop.eup %2184  ;;  %1045 = vst [vmem:[#allocation2 + $0x160] sm:$0xff] %v981_v33  ;;  %v983_v47 = vadd.f32 %v919_v34, %v599_v28  ;;  %v921_v48 = vmul.f32 %v2183_v39, %v857_v29  ;;  %2204 = vpow2.f32 %v799_v37  ;;  %v866_v23 = vld [vmem:[%s3074_s18 + $0x1c8] sm:$0xff]  ;;  %v609_v27 = vld [vmem:[%s3066_s13 + $0x1c0] sm:$0xff]  ;;  %v867_v28 = vld [vmem:[%s3074_s18 + $0x1d0] sm:$0xff] }
 0x170   : > { %v2187_v53 = vpop.eup %2186  ;;  %1046 = vst [vmem:[#allocation2 + $0x168] sm:$0xff] %v982_v40  ;;  %v984_v54 = vadd.f32 %v920_v41, %v600_v35  ;;  %v922_v55 = vmul.f32 %v2185_v46, %v858_v36  ;;  %2206 = vpow2.f32 %v801_v44  ;;  %v610_v32 = vld [vmem:[%s3066_s13 + $0x1c8] sm:$0xff]  ;;  %v868_v33 = vld [vmem:[%s3074_s18 + $0x1d8] sm:$0xff]  ;;  %v611_v37 = vld [vmem:[%s3066_s13 + $0x1d0] sm:$0xff]  ;;  %vm1074_vm0 = vcmp.lt.s32.totalorder %v1072_v59, 256 }
 0x171   : > { %v2189_v60 = vpop.eup %2188  ;;  %1047 = vst [vmem:[#allocation2 + $0x170] sm:$0xff] %v983_v47  ;;  %v985_v61 = vadd.f32 %v921_v48, %v601_v42  ;;  %v923_v62 = vmul.f32 %v2187_v53, %v859_v43  ;;  %2208 = vpow2.f32 %v803_v51  ;;  %v869_v38 = vld [vmem:[%s3074_s18 + $0x1e0] sm:$0xff]  ;;  %v612_v42 = vld [vmem:[%s3066_s13 + $0x1d8] sm:$0xff]  ;;  %v870_v43 = vld [vmem:[%s3074_s18 + $0x1e8] sm:$0xff] }
 0x172   : > { %v2191_v3 = vpop.eup %2190  ;;  %1048 = vst [vmem:[#allocation2 + $0x178] sm:$0xff] %v984_v54  ;;  %v986_v4 = vadd.f32 %v922_v55, %v602_v49  ;;  %v924_v5 = vmul.f32 %v2189_v60, %v860_v50  ;;  %2210 = vpow2.f32 %v805_v58  ;;  %v613_v47 = vld [vmem:[%s3066_s13 + $0x1e0] sm:$0xff]  ;;  %v871_v48 = vld [vmem:[%s3074_s18 + $0x1f0] sm:$0xff]  ;;  %v614_v52 = vld [vmem:[%s3066_s13 + $0x1e8] sm:$0xff] }
 0x173   : > { %v2193_v9 = vpop.eup %2192  ;;  %1049 = vst [vmem:[#allocation2 + $0x180] sm:$0xff] %v985_v61  ;;  %v987_v10 = vadd.f32 %v923_v62, %v603_v56  ;;  %v925_v11 = vmul.f32 %v2191_v3, %v861_v57  ;;  %2212 = vpow2.f32 %v807_v1  ;;  %v872_v53 = vld [vmem:[%s3074_s18 + $0x1f8] sm:$0xff]  ;;  %v615_v57 = vld [vmem:[%s3066_s13 + $0x1f0] sm:$0xff]  ;;  %v1069_v58 = vld [vmem:[%s479_s21] sm:$0x3] }
 0x174   : > { %v2195_v14 = vpop.eup %2194  ;;  %1050 = vst [vmem:[#allocation2 + $0x188] sm:$0xff] %v986_v4  ;;  %v988_v15 = vadd.f32 %v924_v5, %v604_v63  ;;  %v926_v16 = vmul.f32 %v2193_v9, %v862_v0  ;;  %2214 = vpow2.f32 %v1067_v8  ;;  %v616_v63 = vld [vmem:[%s3066_s13 + $0x1f8] sm:$0xff]  ;;  %v1065_v3 = vld [vmem:[%s461_s0] sm:$0x3] }
 0x175   : > { %v2197_v19 = vpop.eup %2196  ;;  %1051 = vst [vmem:[#allocation2 + $0x190] sm:$0xff] %v987_v10  ;;  %v989_v20 = vadd.f32 %v925_v11, %v605_v6  ;;  %v927_v21 = vmul.f32 %v2195_v14, %v863_v7 }
 0x176   : > { %v2199_v24 = vpop.eup %2198  ;;  %1052 = vst [vmem:[#allocation2 + $0x198] sm:$0xff] %v988_v15  ;;  %v990_v25 = vadd.f32 %v926_v16, %v606_v12  ;;  %v928_v26 = vmul.f32 %v2197_v19, %v864_v13 }
 0x177   : > { %v2201_v29 = vpop.eup %2200  ;;  %1053 = vst [vmem:[#allocation2 + $0x1a0] sm:$0xff] %v989_v20  ;;  %v991_v30 = vadd.f32 %v927_v21, %v607_v17  ;;  %v929_v31 = vmul.f32 %v2199_v24, %v865_v18 }
 0x178   : > { %v2203_v34 = vpop.eup %2202  ;;  %1054 = vst [vmem:[#allocation2 + $0x1a8] sm:$0xff] %v990_v25  ;;  %v992_v35 = vadd.f32 %v928_v26, %v608_v22  ;;  %v930_v36 = vmul.f32 %v2201_v29, %v866_v23 }
 0x179   : > { %v2205_v39 = vpop.eup %2204  ;;  %1055 = vst [vmem:[#allocation2 + $0x1b0] sm:$0xff] %v991_v30  ;;  %v993_v40 = vadd.f32 %v929_v31, %v609_v27  ;;  %v931_v41 = vmul.f32 %v2203_v34, %v867_v28 }
 0x17a   : > { %v2207_v44 = vpop.eup %2206  ;;  %1056 = vst [vmem:[#allocation2 + $0x1b8] sm:$0xff] %v992_v35  ;;  %v994_v45 = vadd.f32 %v930_v36, %v610_v32  ;;  %v932_v46 = vmul.f32 %v2205_v39, %v868_v33 }
 0x17b   : > { %v2209_v49 = vpop.eup %2208  ;;  %1057 = vst [vmem:[#allocation2 + $0x1c0] sm:$0xff] %v993_v40  ;;  %v995_v50 = vadd.f32 %v931_v41, %v611_v37  ;;  %v933_v51 = vmul.f32 %v2207_v44, %v869_v38 }
 0x17c   : > { %v2211_v54 = vpop.eup %2210  ;;  %1058 = vst [vmem:[#allocation2 + $0x1c8] sm:$0xff] %v994_v45  ;;  %v996_v55 = vadd.f32 %v932_v46, %v612_v42  ;;  %v934_v56 = vmul.f32 %v2209_v49, %v870_v43 }
 0x17d   : > { %v2213_v60 = vpop.eup %2212  ;;  %1059 = vst [vmem:[#allocation2 + $0x1d0] sm:$0xff] %v995_v50  ;;  %v997_v61 = vadd.f32 %v933_v51, %v613_v47  ;;  %v935_v62 = vmul.f32 %v2211_v54, %v871_v48 }
 0x17e   : > { %v2215_v0 = vpop.eup %2214  ;;  %1060 = vst [vmem:[#allocation2 + $0x1d8] sm:$0xff] %v996_v55  ;;  %v998_v1 = vadd.f32 %v934_v56, %v614_v52  ;;  %v936_v2 = vmul.f32 %v2213_v60, %v872_v53 }
 0x17f   : > { %1061 = vst [vmem:[#allocation2 + $0x1e0] sm:$0xff] %v997_v61  ;;  %v999_v4 = vadd.f32 %v935_v62, %v615_v57  ;;  %v1070_v5 = vmul.f32 %v2215_v0, %v1069_v58 }
 0x180   : > { %1062 = vst [vmem:[#allocation2 + $0x1e8] sm:$0xff] %v998_v1  ;;  %v1000_v6 = vadd.f32 %v936_v2, %v616_v63 }
 0x181   : > { %1063 = vst [vmem:[#allocation2 + $0x1f0] sm:$0xff] %v999_v4  ;;  %v1071_v7 = vadd.f32 %v1070_v5, %v1065_v3 }
 0x182   : > { %1064 = vst [vmem:[#allocation2 + $0x1f8] sm:$0xff] %v1000_v6 }
 0x183   : > { %1076 = vst.msk [vmem:[#allocation3] sm:$0x3] %vm1074_vm0, %v1071_v7 }
 0x184 PF: > { %v1142_v8 = vld [vmem:[#allocation2 + $0x8] sm:$0xff]  ;;  %v1144_v9 = vld [vmem:[#allocation2 + $0x18] sm:$0xff]  ;;  %v1141_v10 = vld [vmem:[#allocation2] sm:$0xff]  ;;  %s3686_s10 = sld [smem:[#allocation25_spill]]  ;;  %s1555_s19 = sshll.u32 %s3092_s20, 4  ;;  %s3491_s19 = int_to_ptr.vmem [resolvable:$true] %s1555_s19 }
 0x185   : > { %v1828_v11 = vpack.c.bf16 %v1144_v9, %v1142_v8  ;;  %v1143_v12 = vld [vmem:[#allocation2 + $0x10] sm:$0xff]  ;;  %v1146_v13 = vld [vmem:[#allocation2 + $0x28] sm:$0xff]  ;;  %v1148_v14 = vld [vmem:[#allocation2 + $0x38] sm:$0xff]  ;;  %s3688_s15 = sld [smem:[#allocation44_spill]]  ;;  %s3501_s22 = scalar_lea.sflag [#allocation6], %s537_s9 }
 0x186   : > { %v1830_v15 = vpack.c.bf16 %v1143_v12, %v1141_v10  ;;  %v1832_v16 = vpack.c.bf16 %v1148_v14, %v1146_v13  ;;  %v1145_v17 = vld [vmem:[#allocation2 + $0x20] sm:$0xff]  ;;  %v1147_v18 = vld [vmem:[#allocation2 + $0x30] sm:$0xff]  ;;  %v1150_v19 = vld [vmem:[#allocation2 + $0x48] sm:$0xff]  ;;  %s2426_s0 = scalar_lea.vmem %s3491_s19, 8192  ;;  %p3689_p4 = scmp.ne.s32.totalorder %s3660_s4, 0 }
 0x187   : > { %1829 = vmatprep.subr.bf16.mxu0 %v1828_v11  ;;  %1892 = vmatprep.subr.bf16.mxu1 %v1828_v11  ;;  %v1152_v20 = vld [vmem:[#allocation2 + $0x58] sm:$0xff]  ;;  %v1834_v21 = vpack.c.bf16 %v1147_v18, %v1145_v17  ;;  %v1149_v23 = vld [vmem:[#allocation2 + $0x40] sm:$0xff]  ;;  %v1151_v24 = vld [vmem:[#allocation2 + $0x50] sm:$0xff]  ;;  %p2427_p12 = scmp.ne.s32.totalorder %s3491_s19, %s2426_s0  ;;  %s2595_s24 = smov [#allocation16]  }
 0x188   : > { %1831 = vmatpush1.bf16.xpose.msra.mxu0 %v1830_v15  ;;  %1908 = vmatpush1.bf16.xpose.msra.mxu1 %v1830_v15  ;;  %v1836_v22 = vpack.c.bf16 %v1152_v20, %v1150_v19  ;;  %v1154_v25 = vld [vmem:[#allocation2 + $0x68] sm:$0xff]  ;;  %v1156_v26 = vld [vmem:[#allocation2 + $0x78] sm:$0xff]  ;;  %v1838_v27 = vpack.c.bf16 %v1151_v24, %v1149_v23  ;;  %v1153_v29 = vld [vmem:[#allocation2 + $0x60] sm:$0xff]  ;;  %s2430_s12 = sshll.u32 %s2595_s24, 4  ;;  %s2431_s12 = int_to_ptr.vmem [resolvable:$false] %s2430_s12 }
 0x189   : > { %1833 = vmatprep.subr.bf16.mxu0 %v1832_v16  ;;  %1893 = vmatprep.subr.bf16.mxu1 %v1832_v16  ;;  %v1840_v28 = vpack.c.bf16 %v1156_v26, %v1154_v25  ;;  %v1155_v30 = vld [vmem:[#allocation2 + $0x70] sm:$0xff]  ;;  %v1158_v33 = vld [vmem:[#allocation2 + $0x88] sm:$0xff]  ;;  %v1160_v34 = vld [vmem:[#allocation2 + $0x98] sm:$0xff]  ;;  %p2428_p6 = pnand %p2427_p12, %p3689_p4  ;;  %s2432_s11 = scalar_lea.vmem %s2431_s12, 16384 }
 0x18a   : > { %v1078_v31 = vld [vmem:[%s3058_s2 + $0x8] sm:$0xff]  ;;  %v1842_v35 = vpack.c.bf16 %v1155_v30, %v1153_v29  ;;  %v1844_v36 = vpack.c.bf16 %v1160_v34, %v1158_v33  ;;  %v1157_v37 = vld [vmem:[#allocation2 + $0x80] sm:$0xff]  ;;  %v1164_v40 = vld [vmem:[#allocation2 + $0xb8] sm:$0xff]  ;;  %s1924_s7 = smul.u32 192, %s3686_s10  ;;  %p2433_p8 = scmp.lt.s32.totalorder %s3491_s19, %s2431_s12 }
 0x18b   : > { %v1110_v32 = vld [vmem:[%s3058_s2 + $0x108] sm:$0xff]  ;;  %1281 = vmatprep.mubr.f32.mxu0 %v1078_v31  ;;  %v1161_v43 = vld [vmem:[#allocation2 + $0xa0] sm:$0xff]  ;;  %v1168_v46 = vld [vmem:[#allocation2 + $0xd8] sm:$0xff]  ;;  %p2429_p11 = pneg %p2428_p6  ;;  %p2434_p3 = scmp.lt.s32.totalorder %s2432_s11, %s2426_s0 }
 0x18c   : > { %1377 = vmatprep.mubr.f32.mxu1 %v1110_v32  ;;  %v1159_v38 = vld [vmem:[#allocation2 + $0x90] sm:$0xff]  ;;  %v1162_v39 = vld [vmem:[#allocation2 + $0xa8] sm:$0xff]  ;;  %v1165_v49 = vld [vmem:[#allocation2 + $0xc0] sm:$0xff] }
 0x18d   : > { %v1846_v41 = vpack.c.bf16 %v1159_v38, %v1157_v37  ;;  %v1848_v42 = vpack.c.bf16 %v1164_v40, %v1162_v39  ;;  %v1163_v44 = vld [vmem:[#allocation2 + $0xb0] sm:$0xff]  ;;  %v1166_v45 = vld [vmem:[#allocation2 + $0xc8] sm:$0xff]  ;;  %v1172_v52 = vld [vmem:[#allocation2 + $0xf8] sm:$0xff]  ;;  %p2435_p10 = por %p2434_p3, %p2433_p8 }
 0x18e   : > { %v1850_v47 = vpack.c.bf16 %v1163_v44, %v1161_v43  ;;  %v1852_v48 = vpack.c.bf16 %v1168_v46, %v1166_v45  ;;  %v1167_v50 = vld [vmem:[#allocation2 + $0xd0] sm:$0xff]  ;;  %v1170_v51 = vld [vmem:[#allocation2 + $0xe8] sm:$0xff]  ;;  %v1169_v55 = vld [vmem:[#allocation2 + $0xe0] sm:$0xff] }
 0x18f   : > { %v1854_v53 = vpack.c.bf16 %v1167_v50, %v1165_v49  ;;  %v1856_v54 = vpack.c.bf16 %v1172_v52, %v1170_v51  ;;  %v1171_v56 = vld [vmem:[#allocation2 + $0xf0] sm:$0xff]  ;;  %v1174_v57 = vld [vmem:[#allocation2 + $0x108] sm:$0xff]  ;;  %v1176_v58 = vld [vmem:[#allocation2 + $0x118] sm:$0xff]  ;;  %p2436_p2 = pnand %p2435_p10, %p2429_p11 }
 0x190   : > { %1835 = vmatpush1.bf16.xpose.msra.mxu0 %v1834_v21  ;;  %1909 = vmatpush1.bf16.xpose.msra.mxu1 %v1834_v21  ;;  %v1858_v59 = vpack.c.bf16 %v1171_v56, %v1169_v55  ;;  %v1860_v60 = vpack.c.bf16 %v1176_v58, %v1174_v57  ;;  %v1173_v61 = vld [vmem:[#allocation2 + $0x100] sm:$0xff]  ;;  %v1175_v62 = vld [vmem:[#allocation2 + $0x110] sm:$0xff]  ;;  %v1178_v63 = vld [vmem:[#allocation2 + $0x128] sm:$0xff] }
 0x191   : > { %1837 = vmatprep.subr.bf16.mxu0 %v1836_v22  ;;  %1894 = vmatprep.subr.bf16.mxu1 %v1836_v22  ;;  %v1180_v0 = vld [vmem:[#allocation2 + $0x138] sm:$0xff]  ;;  %v1862_v1 = vpack.c.bf16 %v1175_v62, %v1173_v61  ;;  %v1177_v3 = vld [vmem:[#allocation2 + $0x120] sm:$0xff]  ;;  %v1179_v4 = vld [vmem:[#allocation2 + $0x130] sm:$0xff] }
 0x192   : > { %v1864_v2 = vpack.c.bf16 %v1180_v0, %v1178_v63  ;;  %v1182_v5 = vld [vmem:[#allocation2 + $0x148] sm:$0xff]  ;;  %v1184_v6 = vld [vmem:[#allocation2 + $0x158] sm:$0xff]  ;;  %v1866_v7 = vpack.c.bf16 %v1179_v4, %v1177_v3  ;;  %v1181_v9 = vld [vmem:[#allocation2 + $0x140] sm:$0xff] }
 0x193   : > { %v1868_v8 = vpack.c.bf16 %v1184_v6, %v1182_v5  ;;  %v1183_v10 = vld [vmem:[#allocation2 + $0x150] sm:$0xff]  ;;  %v1186_v11 = vld [vmem:[#allocation2 + $0x168] sm:$0xff]  ;;  %v1188_v12 = vld [vmem:[#allocation2 + $0x178] sm:$0xff] }
 0x194   : > { %v1870_v13 = vpack.c.bf16 %v1183_v10, %v1181_v9  ;;  %v1872_v14 = vpack.c.bf16 %v1188_v12, %v1186_v11  ;;  %v1185_v15 = vld [vmem:[#allocation2 + $0x160] sm:$0xff]  ;;  %v1187_v16 = vld [vmem:[#allocation2 + $0x170] sm:$0xff]  ;;  %v1190_v17 = vld [vmem:[#allocation2 + $0x188] sm:$0xff] }
 0x195   : > { %v1192_v18 = vld [vmem:[#allocation2 + $0x198] sm:$0xff]  ;;  %v1874_v19 = vpack.c.bf16 %v1187_v16, %v1185_v15  ;;  %v1189_v21 = vld [vmem:[#allocation2 + $0x180] sm:$0xff]  ;;  %v1191_v22 = vld [vmem:[#allocation2 + $0x190] sm:$0xff] }
 0x196   : > { %v1876_v20 = vpack.c.bf16 %v1192_v18, %v1190_v17  ;;  %v1194_v23 = vld [vmem:[#allocation2 + $0x1a8] sm:$0xff]  ;;  %v1196_v24 = vld [vmem:[#allocation2 + $0x1b8] sm:$0xff]  ;;  %v1878_v25 = vpack.c.bf16 %v1191_v22, %v1189_v21  ;;  %v1197_v33 = vld [vmem:[#allocation2 + $0x1c0] sm:$0xff] }
 0x197   : > { %v1880_v26 = vpack.c.bf16 %v1196_v24, %v1194_v23  ;;  %v1198_v29 = vld [vmem:[#allocation2 + $0x1c8] sm:$0xff]  ;;  %v1200_v30 = vld [vmem:[#allocation2 + $0x1d8] sm:$0xff]  ;;  %v1199_v34 = vld [vmem:[#allocation2 + $0x1d0] sm:$0xff] }
 0x198   : > { %1839 = vmatpush1.bf16.xpose.msra.mxu0 %v1838_v27  ;;  %1910 = vmatpush1.bf16.xpose.msra.mxu1 %v1838_v27  ;;  %v1193_v27 = vld [vmem:[#allocation2 + $0x1a0] sm:$0xff]  ;;  %v1884_v32 = vpack.c.bf16 %v1200_v30, %v1198_v29  ;;  %v1886_v37 = vpack.c.bf16 %v1199_v34, %v1197_v33  ;;  %v1203_v40 = vld [vmem:[#allocation2 + $0x1f0] sm:$0xff] }
 0x199   : > { %1841 = vmatprep.subr.bf16.mxu0 %v1840_v28  ;;  %1895 = vmatprep.subr.bf16.mxu1 %v1840_v28  ;;  %v1195_v28 = vld [vmem:[#allocation2 + $0x1b0] sm:$0xff]  ;;  %v1201_v39 = vld [vmem:[#allocation2 + $0x1e0] sm:$0xff] }
 0x19a   : > { %v1882_v31 = vpack.c.bf16 %v1195_v28, %v1193_v27  ;;  %v1109_v43 = vld [vmem:[%s3058_s2 + $0x100] sm:$0xff]  ;;  %v1080_v44 = vld [vmem:[%s3058_s2 + $0x18] sm:$0xff]  ;;  %v1079_v46 = vld [vmem:[%s3058_s2 + $0x10] sm:$0xff] }
 0x19b   : > { %v1112_v45 = vld [vmem:[%s3058_s2 + $0x118] sm:$0xff]  ;;  %v1114_v49 = vld [vmem:[%s3058_s2 + $0x128] sm:$0xff]  ;;  %v1081_v50 = vld [vmem:[%s3058_s2 + $0x20] sm:$0xff] }
 0x19c   : > { %v1113_v51 = vld [vmem:[%s3058_s2 + $0x120] sm:$0xff]  ;;  %v1084_v52 = vld [vmem:[%s3058_s2 + $0x38] sm:$0xff]  ;;  %v1115_v55 = vld [vmem:[%s3058_s2 + $0x130] sm:$0xff] }
 0x19d   : > { %v1086_v56 = vld [vmem:[%s3058_s2 + $0x48] sm:$0xff]  ;;  %v1085_v58 = vld [vmem:[%s3058_s2 + $0x40] sm:$0xff]  ;;  %v1120_v61 = vld [vmem:[%s3058_s2 + $0x158] sm:$0xff] }
 0x19e   : > { %v1118_v57 = vld [vmem:[%s3058_s2 + $0x148] sm:$0xff]  ;;  %v1087_v62 = vld [vmem:[%s3058_s2 + $0x50] sm:$0xff]  ;;  %v1121_v3 = vld [vmem:[%s3058_s2 + $0x160] sm:$0xff] }
 0x19f   : > { %v1119_v63 = vld [vmem:[%s3058_s2 + $0x150] sm:$0xff]  ;;  %v1090_v0 = vld [vmem:[%s3058_s2 + $0x68] sm:$0xff]  ;;  %v1092_v4 = vld [vmem:[%s3058_s2 + $0x78] sm:$0xff] }
 0x1a0   : > { %1843 = vmatpush1.bf16.xpose.msra.mxu0 %v1842_v35  ;;  %1911 = vmatpush1.bf16.xpose.msra.mxu1 %v1842_v35  ;;  %v1202_v35 = vld [vmem:[#allocation2 + $0x1e8] sm:$0xff]  ;;  %v1124_v5 = vld [vmem:[%s3058_s2 + $0x178] sm:$0xff]  ;;  %v1091_v6 = vld [vmem:[%s3058_s2 + $0x70] sm:$0xff] }
 0x1a1   : > { %1845 = vmatprep.subr.bf16.mxu0 %v1844_v36  ;;  %1896 = vmatprep.subr.bf16.mxu1 %v1844_v36  ;;  %v1204_v36 = vld [vmem:[#allocation2 + $0x1f8] sm:$0xff]  ;;  %v1126_v9 = vld [vmem:[%s3058_s2 + $0x188] sm:$0xff]  ;;  %v1093_v10 = vld [vmem:[%s3058_s2 + $0x80] sm:$0xff] }
 0x1a2   : > { %v1888_v38 = vpack.c.bf16 %v1204_v36, %v1202_v35  ;;  %v1125_v11 = vld [vmem:[%s3058_s2 + $0x180] sm:$0xff]  ;;  %v1096_v12 = vld [vmem:[%s3058_s2 + $0x98] sm:$0xff]  ;;  %v1127_v15 = vld [vmem:[%s3058_s2 + $0x190] sm:$0xff] }
 0x1a3   : > { %v1098_v16 = vld [vmem:[%s3058_s2 + $0xa8] sm:$0xff]  ;;  %v1097_v18 = vld [vmem:[%s3058_s2 + $0xa0] sm:$0xff]  ;;  %v1132_v21 = vld [vmem:[%s3058_s2 + $0x1b8] sm:$0xff] }
 0x1a4   : > { %v1130_v17 = vld [vmem:[%s3058_s2 + $0x1a8] sm:$0xff]  ;;  %v1099_v22 = vld [vmem:[%s3058_s2 + $0xb0] sm:$0xff]  ;;  %v1133_v27 = vld [vmem:[%s3058_s2 + $0x1c0] sm:$0xff] }
 0x1a5   : > { %v1131_v23 = vld [vmem:[%s3058_s2 + $0x1b0] sm:$0xff]  ;;  %v1102_v24 = vld [vmem:[%s3058_s2 + $0xc8] sm:$0xff]  ;;  %v1104_v28 = vld [vmem:[%s3058_s2 + $0xd8] sm:$0xff] }
 0x1a6   : > { %v1136_v29 = vld [vmem:[%s3058_s2 + $0x1d8] sm:$0xff]  ;;  %v1103_v30 = vld [vmem:[%s3058_s2 + $0xd0] sm:$0xff]  ;;  %v1138_v33 = vld [vmem:[%s3058_s2 + $0x1e8] sm:$0xff] }
 0x1a7   : > { %v1105_v34 = vld [vmem:[%s3058_s2 + $0xe0] sm:$0xff]  ;;  %v1108_v36 = vld [vmem:[%s3058_s2 + $0xf8] sm:$0xff] }
 0x1a8   : > { %1847 = vmatpush1.bf16.xpose.msra.mxu0 %v1846_v41  ;;  %1912 = vmatpush1.bf16.xpose.msra.mxu1 %v1846_v41  ;;  %v1890_v41 = vpack.c.bf16 %v1203_v40, %v1201_v39  ;;  %v1137_v35 = vld [vmem:[%s3058_s2 + $0x1e0] sm:$0xff]  ;;  %v1139_v39 = vld [vmem:[%s3058_s2 + $0x1f0] sm:$0xff]  ;;  %v1207_v40 = vlaneseq }
 0x1a9   : > { %1849 = vmatprep.subr.bf16.mxu0 %v1848_v42  ;;  %1897 = vmatprep.subr.bf16.mxu1 %v1848_v42  ;;  %v1077_v42 = vld [vmem:[%s3058_s2] sm:$0xff] }
 0x1b0   : > { %1851 = vmatpush1.bf16.xpose.msra.mxu0 %v1850_v47  ;;  %1913 = vmatpush1.bf16.xpose.msra.mxu1 %v1850_v47  ;;  %v1111_v47 = vld [vmem:[%s3058_s2 + $0x110] sm:$0xff] }
 0x1b1   : > { %1853 = vmatprep.subr.bf16.mxu0 %v1852_v48  ;;  %1898 = vmatprep.subr.bf16.mxu1 %v1852_v48  ;;  %v1082_v48 = vld [vmem:[%s3058_s2 + $0x28] sm:$0xff] }
 0x1b8   : > { %1855 = vmatpush1.bf16.xpose.msra.mxu0 %v1854_v53  ;;  %1914 = vmatpush1.bf16.xpose.msra.mxu1 %v1854_v53  ;;  %v1116_v53 = vld [vmem:[%s3058_s2 + $0x138] sm:$0xff] }
 0x1b9   : > { %1857 = vmatprep.subr.bf16.mxu0 %v1856_v54  ;;  %1899 = vmatprep.subr.bf16.mxu1 %v1856_v54  ;;  %v1083_v54 = vld [vmem:[%s3058_s2 + $0x30] sm:$0xff] }
 0x1c0   : > { %1859 = vmatpush1.bf16.xpose.msra.mxu0 %v1858_v59  ;;  %1915 = vmatpush1.bf16.xpose.msra.mxu1 %v1858_v59  ;;  %v1117_v59 = vld [vmem:[%s3058_s2 + $0x140] sm:$0xff] }
 0x1c1   : > { %1861 = vmatprep.subr.bf16.mxu0 %v1860_v60  ;;  %1900 = vmatprep.subr.bf16.mxu1 %v1860_v60  ;;  %v1088_v60 = vld [vmem:[%s3058_s2 + $0x58] sm:$0xff] }
 0x1c8   : > { %1863 = vmatpush1.bf16.xpose.msra.mxu0 %v1862_v1  ;;  %1916 = vmatpush1.bf16.xpose.msra.mxu1 %v1862_v1  ;;  %v1122_v1 = vld [vmem:[%s3058_s2 + $0x168] sm:$0xff] }
 0x1c9   : > { %1865 = vmatprep.subr.bf16.mxu0 %v1864_v2  ;;  %1901 = vmatprep.subr.bf16.mxu1 %v1864_v2  ;;  %v1089_v2 = vld [vmem:[%s3058_s2 + $0x60] sm:$0xff] }
 0x1d0   : > { %1867 = vmatpush1.bf16.xpose.msra.mxu0 %v1866_v7  ;;  %1917 = vmatpush1.bf16.xpose.msra.mxu1 %v1866_v7  ;;  %v1123_v7 = vld [vmem:[%s3058_s2 + $0x170] sm:$0xff] }
 0x1d1   : > { %1869 = vmatprep.subr.bf16.mxu0 %v1868_v8  ;;  %1902 = vmatprep.subr.bf16.mxu1 %v1868_v8  ;;  %v1094_v8 = vld [vmem:[%s3058_s2 + $0x88] sm:$0xff] }
 0x1d8   : > { %1871 = vmatpush1.bf16.xpose.msra.mxu0 %v1870_v13  ;;  %1918 = vmatpush1.bf16.xpose.msra.mxu1 %v1870_v13  ;;  %v1128_v13 = vld [vmem:[%s3058_s2 + $0x198] sm:$0xff] }
 0x1d9   : > { %1873 = vmatprep.subr.bf16.mxu0 %v1872_v14  ;;  %1903 = vmatprep.subr.bf16.mxu1 %v1872_v14  ;;  %v1095_v14 = vld [vmem:[%s3058_s2 + $0x90] sm:$0xff] }
 0x1e0   : > { %1875 = vmatpush1.bf16.xpose.msra.mxu0 %v1874_v19  ;;  %1919 = vmatpush1.bf16.xpose.msra.mxu1 %v1874_v19  ;;  %v1129_v19 = vld [vmem:[%s3058_s2 + $0x1a0] sm:$0xff] }
 0x1e1   : > { %1877 = vmatprep.subr.bf16.mxu0 %v1876_v20  ;;  %1904 = vmatprep.subr.bf16.mxu1 %v1876_v20  ;;  %v1100_v20 = vld [vmem:[%s3058_s2 + $0xb8] sm:$0xff] }
 0x1e8   : > { %1879 = vmatpush1.bf16.xpose.msra.mxu0 %v1878_v25  ;;  %1920 = vmatpush1.bf16.xpose.msra.mxu1 %v1878_v25  ;;  %v1134_v25 = vld [vmem:[%s3058_s2 + $0x1c8] sm:$0xff] }
 0x1e9   : > { %1881 = vmatprep.subr.bf16.mxu0 %v1880_v26  ;;  %1905 = vmatprep.subr.bf16.mxu1 %v1880_v26  ;;  %v1101_v26 = vld [vmem:[%s3058_s2 + $0xc0] sm:$0xff] }
 0x1f0   : > { %1883 = vmatpush1.bf16.xpose.msra.mxu0 %v1882_v31  ;;  %1921 = vmatpush1.bf16.xpose.msra.mxu1 %v1882_v31  ;;  %v1135_v31 = vld [vmem:[%s3058_s2 + $0x1d0] sm:$0xff] }
 0x1f1   : > { %1885 = vmatprep.subr.bf16.mxu0 %v1884_v32  ;;  %1906 = vmatprep.subr.bf16.mxu1 %v1884_v32  ;;  %v1106_v32 = vld [vmem:[%s3058_s2 + $0xe8] sm:$0xff] }
 0x1f8   : > { %1887 = vmatpush1.bf16.xpose.msra.mxu0 %v1886_v37  ;;  %1922 = vmatpush1.bf16.xpose.msra.mxu1 %v1886_v37  ;;  %v1140_v37 = vld [vmem:[%s3058_s2 + $0x1f8] sm:$0xff] }
 0x1f9   : > { %1889 = vmatprep.subr.bf16.mxu0 %v1888_v38  ;;  %1907 = vmatprep.subr.bf16.mxu1 %v1888_v38  ;;  %v1107_v38 = vld [vmem:[%s3058_s2 + $0xf0] sm:$0xff]  ;;  %s3687_s2 = sld [smem:[#allocation26_spill]] }
 0x1ff   : > { %s1812_s16 = sshll.u32 %s3687_s2, 1 }
 0x200   : > { %1891 = vmatpush1.bf16.xpose.msra.mxu0 %v1890_v41  ;;  %1923 = vmatpush1.bf16.xpose.msra.mxu1 %v1890_v41  ;;  %v1208_v41 = vshrl.u32 %v1207_v40, 7  ;;  %s1552_s8 = sadd.s32 %s1924_s7, %s1812_s16 }
 0x201   : > { %s1814_s30 = sshll.u32 %s1552_s8, 7 }
 0x202   : > { %s3487_s18 = scalar_lea.hbm %s3688_s15, %s1814_s30 }
 0x207   : > { %1282 = vmatmul.mubr.f32.vlgmr.msra.gmra.mrb[0].mxu0 %v1077_v42  ;;  %1378 = vmatmul.mubr.f32.vlgmr.msra.gmra.mrb[0].mxu1 %v1109_v43  ;;  %v1209_v42 = vsub.s32 0, %v1208_v41  ;;  %v1205_v43 = vld [vmem:[#allocation3] sm:$0x3] }
 0x208   : > { %1287 = vmatprep.mubr.f32.mxu0 %v1080_v44  ;;  %1383 = vmatprep.mubr.f32.mxu1 %v1112_v45  ;;  %v1213_v44 = vsub.s32 1, %v1208_v41 }
 0x209   : > { %v3357_v45 = vrot.slane %v1205_v43, %v1209_v42 }
 0x20b   : > { %1288 = vmatmul.mubr.f32.gmra.mrb[2].mxu0 %v1079_v46  ;;  %1384 = vmatmul.mubr.f32.gmra.mrb[2].mxu1 %v1111_v47  ;;  %v3359_v46 = vrot.slane %v1205_v43, %v1213_v44 }
 0x20c   : > { %1293 = vmatprep.mubr.f32.mxu0 %v1082_v48  ;;  %1389 = vmatprep.mubr.f32.mxu1 %v1114_v49 }
 0x20f   : > { %1294 = vmatmul.mubr.f32.gmra.mrb[4].mxu0 %v1081_v50  ;;  %1390 = vmatmul.mubr.f32.gmra.mrb[4].mxu1 %v1113_v51 }
 0x210   : > { %1299 = vmatprep.mubr.f32.mxu0 %v1084_v52  ;;  %1395 = vmatprep.mubr.f32.mxu1 %v1116_v53 }
 0x213   : > { %1300 = vmatmul.mubr.f32.gmra.mrb[6].mxu0 %v1083_v54  ;;  %1396 = vmatmul.mubr.f32.gmra.mrb[6].mxu1 %v1115_v55 }
 0x214   : > { %1305 = vmatprep.mubr.f32.mxu0 %v1086_v56  ;;  %1401 = vmatprep.mubr.f32.mxu1 %v1118_v57 }
 0x217   : > { %1306 = vmatmul.mubr.f32.gmra.mrb[8].mxu0 %v1085_v58  ;;  %1402 = vmatmul.mubr.f32.gmra.mrb[8].mxu1 %v1117_v59 }
 0x218   : > { %1311 = vmatprep.mubr.f32.mxu0 %v1088_v60  ;;  %1407 = vmatprep.mubr.f32.mxu1 %v1120_v61 }
 0x21b   : > { %1312 = vmatmul.mubr.f32.gmra.mrb[10].mxu0 %v1087_v62  ;;  %1408 = vmatmul.mubr.f32.gmra.mrb[10].mxu1 %v1119_v63 }
 0x21c   : > { %1317 = vmatprep.mubr.f32.mxu0 %v1090_v0  ;;  %1413 = vmatprep.mubr.f32.mxu1 %v1122_v1 }
 0x21f   : > { %1318 = vmatmul.mubr.f32.gmra.mrb[12].mxu0 %v1089_v2  ;;  %1414 = vmatmul.mubr.f32.gmra.mrb[12].mxu1 %v1121_v3 }
 0x220   : > { %1323 = vmatprep.mubr.f32.mxu0 %v1092_v4  ;;  %1419 = vmatprep.mubr.f32.mxu1 %v1124_v5 }
 0x223   : > { %1324 = vmatmul.mubr.f32.gmra.mrb[14].mxu0 %v1091_v6  ;;  %1420 = vmatmul.mubr.f32.gmra.mrb[14].mxu1 %v1123_v7 }
 0x224   : > { %1329 = vmatprep.mubr.f32.mxu0 %v1094_v8  ;;  %1425 = vmatprep.mubr.f32.mxu1 %v1126_v9 }
 0x227   : > { %1330 = vmatmul.mubr.f32.gmra.mrb[16].mxu0 %v1093_v10  ;;  %1426 = vmatmul.mubr.f32.gmra.mrb[16].mxu1 %v1125_v11 }
 0x228   : > { %1335 = vmatprep.mubr.f32.mxu0 %v1096_v12  ;;  %1431 = vmatprep.mubr.f32.mxu1 %v1128_v13 }
 0x22b   : > { %1336 = vmatmul.mubr.f32.gmra.mrb[18].mxu0 %v1095_v14  ;;  %1432 = vmatmul.mubr.f32.gmra.mrb[18].mxu1 %v1127_v15 }
 0x22c   : > { %1341 = vmatprep.mubr.f32.mxu0 %v1098_v16  ;;  %1437 = vmatprep.mubr.f32.mxu1 %v1130_v17 }
 0x22f   : > { %1342 = vmatmul.mubr.f32.gmra.mrb[20].mxu0 %v1097_v18  ;;  %1438 = vmatmul.mubr.f32.gmra.mrb[20].mxu1 %v1129_v19 }
 0x230   : > { %1347 = vmatprep.mubr.f32.mxu0 %v1100_v20  ;;  %1443 = vmatprep.mubr.f32.mxu1 %v1132_v21 }
 0x233   : > { %1348 = vmatmul.mubr.f32.gmra.mrb[22].mxu0 %v1099_v22  ;;  %1444 = vmatmul.mubr.f32.gmra.mrb[22].mxu1 %v1131_v23 }
 0x234   : > { %1353 = vmatprep.mubr.f32.mxu0 %v1102_v24  ;;  %1449 = vmatprep.mubr.f32.mxu1 %v1134_v25 }
 0x237   : > { %1354 = vmatmul.mubr.f32.gmra.mrb[24].mxu0 %v1101_v26  ;;  %1450 = vmatmul.mubr.f32.gmra.mrb[24].mxu1 %v1133_v27 }
 0x238   : > { %1359 = vmatprep.mubr.f32.mxu0 %v1104_v28  ;;  %1455 = vmatprep.mubr.f32.mxu1 %v1136_v29 }
 0x23b   : > { %1360 = vmatmul.mubr.f32.gmra.mrb[26].mxu0 %v1103_v30  ;;  %1456 = vmatmul.mubr.f32.gmra.mrb[26].mxu1 %v1135_v31 }
 0x23c   : > { %1365 = vmatprep.mubr.f32.mxu0 %v1106_v32  ;;  %1461 = vmatprep.mubr.f32.mxu1 %v1138_v33 }
 0x23f   : > { %1366 = vmatmul.mubr.f32.gmra.mrb[28].mxu0 %v1105_v34  ;;  %1462 = vmatmul.mubr.f32.gmra.mrb[28].mxu1 %v1137_v35 }
 0x240   : > { %1371 = vmatprep.mubr.f32.mxu0 %v1108_v36  ;;  %1467 = vmatprep.mubr.f32.mxu1 %v1140_v37 }
 0x243   : > { %1372 = vmatmul.mubr.f32.gmra.mrb[30].mxu0 %v1107_v38  ;;  %1468 = vmatmul.mubr.f32.gmra.mrb[30].mxu1 %v1139_v39 }
 0x2da   : > { %v1283_v47 = vpop.f32.mrb[0].mxu0  ;;  %v1379_v48 = vpop.f32.mrb[0].mxu1 }
 0x2db   : > { %v1284_v49 = vadd.f32 %v1283_v47, %v3357_v45  ;;  %v1380_v50 = vadd.f32 %v1379_v48, %v3357_v45  ;;  %v1285_v51 = vpop.f32.mrb[1].mxu0  ;;  %v1381_v52 = vpop.f32.mrb[1].mxu1 }
 0x2dc   : > { %v1286_v53 = vadd.f32 %v1285_v51, %v3359_v46  ;;  %v1382_v54 = vadd.f32 %v1381_v52, %v3359_v46 }
 0x2dd   : > { %1474 = vst [vmem:[%s3092_s20] sm:$0xff] %v1284_v49  ;;  %1506 = vst [vmem:[%s3092_s20 + $0x100] sm:$0xff] %v1380_v50 }
 0x2de   : > { %1475 = vst [vmem:[%s3092_s20 + $0x8] sm:$0xff] %v1286_v53  ;;  %1507 = vst [vmem:[%s3092_s20 + $0x108] sm:$0xff] %v1382_v54  ;;  %v1289_v55 = vpop.f32.mrb[2].mxu0  ;;  %v1385_v56 = vpop.f32.mrb[2].mxu1 }
 0x2df   : > { %v1290_v57 = vadd.f32 %v1289_v55, %v3357_v45  ;;  %v1386_v58 = vadd.f32 %v1385_v56, %v3357_v45  ;;  %v1291_v59 = vpop.f32.mrb[3].mxu0  ;;  %v1387_v60 = vpop.f32.mrb[3].mxu1 }
 0x2e0   : > { %v1292_v61 = vadd.f32 %v1291_v59, %v3359_v46  ;;  %v1388_v62 = vadd.f32 %v1387_v60, %v3359_v46 }
 0x2e1   : > { %1476 = vst [vmem:[%s3092_s20 + $0x10] sm:$0xff] %v1290_v57  ;;  %1508 = vst [vmem:[%s3092_s20 + $0x110] sm:$0xff] %v1386_v58 }
 0x2e2   : > { %1477 = vst [vmem:[%s3092_s20 + $0x18] sm:$0xff] %v1292_v61  ;;  %1509 = vst [vmem:[%s3092_s20 + $0x118] sm:$0xff] %v1388_v62  ;;  %v1295_v63 = vpop.f32.mrb[4].mxu0  ;;  %v1391_v0 = vpop.f32.mrb[4].mxu1 }
 0x2e3   : > { %v1296_v1 = vadd.f32 %v1295_v63, %v3357_v45  ;;  %v1392_v2 = vadd.f32 %v1391_v0, %v3357_v45  ;;  %v1297_v3 = vpop.f32.mrb[5].mxu0  ;;  %v1393_v4 = vpop.f32.mrb[5].mxu1 }
 0x2e4   : > { %v1298_v5 = vadd.f32 %v1297_v3, %v3359_v46  ;;  %v1394_v6 = vadd.f32 %v1393_v4, %v3359_v46 }
 0x2e5   : > { %1478 = vst [vmem:[%s3092_s20 + $0x20] sm:$0xff] %v1296_v1  ;;  %1510 = vst [vmem:[%s3092_s20 + $0x120] sm:$0xff] %v1392_v2 }
 0x2e6   : > { %1479 = vst [vmem:[%s3092_s20 + $0x28] sm:$0xff] %v1298_v5  ;;  %1511 = vst [vmem:[%s3092_s20 + $0x128] sm:$0xff] %v1394_v6  ;;  %v1301_v7 = vpop.f32.mrb[6].mxu0  ;;  %v1397_v8 = vpop.f32.mrb[6].mxu1 }
 0x2e7   : > { %v1302_v9 = vadd.f32 %v1301_v7, %v3357_v45  ;;  %v1398_v10 = vadd.f32 %v1397_v8, %v3357_v45  ;;  %v1303_v11 = vpop.f32.mrb[7].mxu0  ;;  %v1399_v12 = vpop.f32.mrb[7].mxu1 }
 0x2e8   : > { %v1304_v13 = vadd.f32 %v1303_v11, %v3359_v46  ;;  %v1400_v14 = vadd.f32 %v1399_v12, %v3359_v46 }
 0x2e9   : > { %1480 = vst [vmem:[%s3092_s20 + $0x30] sm:$0xff] %v1302_v9  ;;  %1512 = vst [vmem:[%s3092_s20 + $0x130] sm:$0xff] %v1398_v10 }
 0x2ea   : > { %1481 = vst [vmem:[%s3092_s20 + $0x38] sm:$0xff] %v1304_v13  ;;  %1513 = vst [vmem:[%s3092_s20 + $0x138] sm:$0xff] %v1400_v14  ;;  %v1307_v15 = vpop.f32.mrb[8].mxu0  ;;  %v1403_v16 = vpop.f32.mrb[8].mxu1 }
 0x2eb   : > { %v1308_v17 = vadd.f32 %v1307_v15, %v3357_v45  ;;  %v1404_v18 = vadd.f32 %v1403_v16, %v3357_v45  ;;  %v1309_v19 = vpop.f32.mrb[9].mxu0  ;;  %v1405_v20 = vpop.f32.mrb[9].mxu1 }
 0x2ec   : > { %v1310_v21 = vadd.f32 %v1309_v19, %v3359_v46  ;;  %v1406_v22 = vadd.f32 %v1405_v20, %v3359_v46 }
 0x2ed   : > { %1482 = vst [vmem:[%s3092_s20 + $0x40] sm:$0xff] %v1308_v17  ;;  %1514 = vst [vmem:[%s3092_s20 + $0x140] sm:$0xff] %v1404_v18 }
 0x2ee   : > { %1483 = vst [vmem:[%s3092_s20 + $0x48] sm:$0xff] %v1310_v21  ;;  %1515 = vst [vmem:[%s3092_s20 + $0x148] sm:$0xff] %v1406_v22  ;;  %v1313_v23 = vpop.f32.mrb[10].mxu0  ;;  %v1409_v24 = vpop.f32.mrb[10].mxu1 }
 0x2ef   : > { %v1314_v25 = vadd.f32 %v1313_v23, %v3357_v45  ;;  %v1410_v26 = vadd.f32 %v1409_v24, %v3357_v45  ;;  %v1315_v27 = vpop.f32.mrb[11].mxu0  ;;  %v1411_v28 = vpop.f32.mrb[11].mxu1 }
 0x2f0   : > { %v1316_v29 = vadd.f32 %v1315_v27, %v3359_v46  ;;  %v1412_v30 = vadd.f32 %v1411_v28, %v3359_v46 }
 0x2f1   : > { %1484 = vst [vmem:[%s3092_s20 + $0x50] sm:$0xff] %v1314_v25  ;;  %1516 = vst [vmem:[%s3092_s20 + $0x150] sm:$0xff] %v1410_v26 }
 0x2f2   : > { %1485 = vst [vmem:[%s3092_s20 + $0x58] sm:$0xff] %v1316_v29  ;;  %1517 = vst [vmem:[%s3092_s20 + $0x158] sm:$0xff] %v1412_v30  ;;  %v1319_v31 = vpop.f32.mrb[12].mxu0  ;;  %v1415_v32 = vpop.f32.mrb[12].mxu1 }
 0x2f3   : > { %v1320_v33 = vadd.f32 %v1319_v31, %v3357_v45  ;;  %v1416_v34 = vadd.f32 %v1415_v32, %v3357_v45  ;;  %v1321_v35 = vpop.f32.mrb[13].mxu0  ;;  %v1417_v36 = vpop.f32.mrb[13].mxu1 }
 0x2f4   : > { %v1322_v37 = vadd.f32 %v1321_v35, %v3359_v46  ;;  %v1418_v38 = vadd.f32 %v1417_v36, %v3359_v46 }
 0x2f5   : > { %1486 = vst [vmem:[%s3092_s20 + $0x60] sm:$0xff] %v1320_v33  ;;  %1518 = vst [vmem:[%s3092_s20 + $0x160] sm:$0xff] %v1416_v34 }
 0x2f6   : > { %1487 = vst [vmem:[%s3092_s20 + $0x68] sm:$0xff] %v1322_v37  ;;  %1519 = vst [vmem:[%s3092_s20 + $0x168] sm:$0xff] %v1418_v38  ;;  %v1325_v39 = vpop.f32.mrb[14].mxu0  ;;  %v1421_v40 = vpop.f32.mrb[14].mxu1 }
 0x2f7   : > { %v1326_v41 = vadd.f32 %v1325_v39, %v3357_v45  ;;  %v1422_v42 = vadd.f32 %v1421_v40, %v3357_v45  ;;  %v1327_v43 = vpop.f32.mrb[15].mxu0  ;;  %v1423_v44 = vpop.f32.mrb[15].mxu1 }
 0x2f8   : > { %v1328_v47 = vadd.f32 %v1327_v43, %v3359_v46  ;;  %v1424_v48 = vadd.f32 %v1423_v44, %v3359_v46 }
 0x2f9   : > { %1488 = vst [vmem:[%s3092_s20 + $0x70] sm:$0xff] %v1326_v41  ;;  %1520 = vst [vmem:[%s3092_s20 + $0x170] sm:$0xff] %v1422_v42 }
 0x2fa   : > { %1489 = vst [vmem:[%s3092_s20 + $0x78] sm:$0xff] %v1328_v47  ;;  %1521 = vst [vmem:[%s3092_s20 + $0x178] sm:$0xff] %v1424_v48  ;;  %v1331_v49 = vpop.f32.mrb[16].mxu0  ;;  %v1427_v50 = vpop.f32.mrb[16].mxu1 }
 0x2fb   : > { %v1332_v51 = vadd.f32 %v1331_v49, %v3357_v45  ;;  %v1428_v52 = vadd.f32 %v1427_v50, %v3357_v45  ;;  %v1333_v53 = vpop.f32.mrb[17].mxu0  ;;  %v1429_v54 = vpop.f32.mrb[17].mxu1 }
 0x2fc   : > { %v1334_v55 = vadd.f32 %v1333_v53, %v3359_v46  ;;  %v1430_v56 = vadd.f32 %v1429_v54, %v3359_v46 }
 0x2fd   : > { %1490 = vst [vmem:[%s3092_s20 + $0x80] sm:$0xff] %v1332_v51  ;;  %1522 = vst [vmem:[%s3092_s20 + $0x180] sm:$0xff] %v1428_v52 }
 0x2fe   : > { %1491 = vst [vmem:[%s3092_s20 + $0x88] sm:$0xff] %v1334_v55  ;;  %1523 = vst [vmem:[%s3092_s20 + $0x188] sm:$0xff] %v1430_v56  ;;  %v1337_v57 = vpop.f32.mrb[18].mxu0  ;;  %v1433_v58 = vpop.f32.mrb[18].mxu1 }
 0x2ff   : > { %v1338_v59 = vadd.f32 %v1337_v57, %v3357_v45  ;;  %v1434_v60 = vadd.f32 %v1433_v58, %v3357_v45  ;;  %v1339_v61 = vpop.f32.mrb[19].mxu0  ;;  %v1435_v62 = vpop.f32.mrb[19].mxu1 }
 0x300   : > { %v1340_v63 = vadd.f32 %v1339_v61, %v3359_v46  ;;  %v1436_v0 = vadd.f32 %v1435_v62, %v3359_v46 }
 0x301   : > { %1492 = vst [vmem:[%s3092_s20 + $0x90] sm:$0xff] %v1338_v59  ;;  %1524 = vst [vmem:[%s3092_s20 + $0x190] sm:$0xff] %v1434_v60 }
 0x302   : > { %1493 = vst [vmem:[%s3092_s20 + $0x98] sm:$0xff] %v1340_v63  ;;  %1525 = vst [vmem:[%s3092_s20 + $0x198] sm:$0xff] %v1436_v0  ;;  %v1343_v1 = vpop.f32.mrb[20].mxu0  ;;  %v1439_v2 = vpop.f32.mrb[20].mxu1 }
 0x303   : > { %v1344_v3 = vadd.f32 %v1343_v1, %v3357_v45  ;;  %v1440_v4 = vadd.f32 %v1439_v2, %v3357_v45  ;;  %v1345_v5 = vpop.f32.mrb[21].mxu0  ;;  %v1441_v6 = vpop.f32.mrb[21].mxu1 }
 0x304   : > { %v1346_v7 = vadd.f32 %v1345_v5, %v3359_v46  ;;  %v1442_v8 = vadd.f32 %v1441_v6, %v3359_v46 }
 0x305   : > { %1494 = vst [vmem:[%s3092_s20 + $0xa0] sm:$0xff] %v1344_v3  ;;  %1526 = vst [vmem:[%s3092_s20 + $0x1a0] sm:$0xff] %v1440_v4 }
 0x306   : > { %1495 = vst [vmem:[%s3092_s20 + $0xa8] sm:$0xff] %v1346_v7  ;;  %1527 = vst [vmem:[%s3092_s20 + $0x1a8] sm:$0xff] %v1442_v8  ;;  %v1349_v9 = vpop.f32.mrb[22].mxu0  ;;  %v1445_v10 = vpop.f32.mrb[22].mxu1 }
 0x307   : > { %v1350_v11 = vadd.f32 %v1349_v9, %v3357_v45  ;;  %v1446_v12 = vadd.f32 %v1445_v10, %v3357_v45  ;;  %v1351_v13 = vpop.f32.mrb[23].mxu0  ;;  %v1447_v14 = vpop.f32.mrb[23].mxu1 }
 0x308   : > { %v1352_v15 = vadd.f32 %v1351_v13, %v3359_v46  ;;  %v1448_v16 = vadd.f32 %v1447_v14, %v3359_v46 }
 0x309   : > { %1496 = vst [vmem:[%s3092_s20 + $0xb0] sm:$0xff] %v1350_v11  ;;  %1528 = vst [vmem:[%s3092_s20 + $0x1b0] sm:$0xff] %v1446_v12 }
 0x30a   : > { %1497 = vst [vmem:[%s3092_s20 + $0xb8] sm:$0xff] %v1352_v15  ;;  %1529 = vst [vmem:[%s3092_s20 + $0x1b8] sm:$0xff] %v1448_v16  ;;  %v1355_v17 = vpop.f32.mrb[24].mxu0  ;;  %v1451_v18 = vpop.f32.mrb[24].mxu1 }
 0x30b   : > { %v1356_v19 = vadd.f32 %v1355_v17, %v3357_v45  ;;  %v1452_v20 = vadd.f32 %v1451_v18, %v3357_v45  ;;  %v1357_v21 = vpop.f32.mrb[25].mxu0  ;;  %v1453_v22 = vpop.f32.mrb[25].mxu1 }
 0x30c   : > { %v1358_v23 = vadd.f32 %v1357_v21, %v3359_v46  ;;  %v1454_v24 = vadd.f32 %v1453_v22, %v3359_v46 }
 0x30d   : > { %1498 = vst [vmem:[%s3092_s20 + $0xc0] sm:$0xff] %v1356_v19  ;;  %1530 = vst [vmem:[%s3092_s20 + $0x1c0] sm:$0xff] %v1452_v20 }
 0x30e   : > { %1499 = vst [vmem:[%s3092_s20 + $0xc8] sm:$0xff] %v1358_v23  ;;  %1531 = vst [vmem:[%s3092_s20 + $0x1c8] sm:$0xff] %v1454_v24  ;;  %v1361_v25 = vpop.f32.mrb[26].mxu0  ;;  %v1457_v26 = vpop.f32.mrb[26].mxu1 }
 0x30f   : > { %v1362_v27 = vadd.f32 %v1361_v25, %v3357_v45  ;;  %v1458_v28 = vadd.f32 %v1457_v26, %v3357_v45  ;;  %v1363_v29 = vpop.f32.mrb[27].mxu0  ;;  %v1459_v30 = vpop.f32.mrb[27].mxu1 }
 0x310   : > { %v1364_v31 = vadd.f32 %v1363_v29, %v3359_v46  ;;  %v1460_v32 = vadd.f32 %v1459_v30, %v3359_v46 }
 0x311   : > { %1500 = vst [vmem:[%s3092_s20 + $0xd0] sm:$0xff] %v1362_v27  ;;  %1532 = vst [vmem:[%s3092_s20 + $0x1d0] sm:$0xff] %v1458_v28 }
 0x312   : > { %1501 = vst [vmem:[%s3092_s20 + $0xd8] sm:$0xff] %v1364_v31  ;;  %1533 = vst [vmem:[%s3092_s20 + $0x1d8] sm:$0xff] %v1460_v32  ;;  %v1367_v33 = vpop.f32.mrb[28].mxu0  ;;  %v1463_v34 = vpop.f32.mrb[28].mxu1 }
 0x313   : > { %v1368_v35 = vadd.f32 %v1367_v33, %v3357_v45  ;;  %v1464_v36 = vadd.f32 %v1463_v34, %v3357_v45  ;;  %v1369_v37 = vpop.f32.mrb[29].mxu0  ;;  %v1465_v38 = vpop.f32.mrb[29].mxu1 }
 0x314   : > { %v1370_v39 = vadd.f32 %v1369_v37, %v3359_v46  ;;  %v1466_v40 = vadd.f32 %v1465_v38, %v3359_v46 }
 0x315   : > { %1502 = vst [vmem:[%s3092_s20 + $0xe0] sm:$0xff] %v1368_v35  ;;  %1534 = vst [vmem:[%s3092_s20 + $0x1e0] sm:$0xff] %v1464_v36 }
 0x316   : > { %1503 = vst [vmem:[%s3092_s20 + $0xe8] sm:$0xff] %v1370_v39  ;;  %1535 = vst [vmem:[%s3092_s20 + $0x1e8] sm:$0xff] %v1466_v40  ;;  %v1373_v41 = vpop.f32.mrb[30].mxu0  ;;  %v1469_v42 = vpop.f32.mrb[30].mxu1 }
 0x317   : > { %v1374_v43 = vadd.f32 %v1373_v41, %v3357_v45  ;;  %v1470_v44 = vadd.f32 %v1469_v42, %v3357_v45  ;;  %v1375_v47 = vpop.f32.mrb[31].mxu0  ;;  %v1471_v48 = vpop.f32.mrb[31].mxu1 }
 0x318   : > { %v1376_v49 = vadd.f32 %v1375_v47, %v3359_v46  ;;  %v1472_v50 = vadd.f32 %v1471_v48, %v3359_v46 }
 0x319   : > { %1504 = vst [vmem:[%s3092_s20 + $0xf0] sm:$0xff] %v1374_v43  ;;  %1536 = vst [vmem:[%s3092_s20 + $0x1f0] sm:$0xff] %v1470_v44 }
 0x31a   : > { %1505 = vst [vmem:[%s3092_s20 + $0xf8] sm:$0xff] %v1376_v49  ;;  %1537 = vst [vmem:[%s3092_s20 + $0x1f8] sm:$0xff] %v1472_v50 }
 0x31b   : > { %2439 = shalt.err (!%p2436_p2)
}
 0x31c   : > { %s2440_s9 = scalar_lea.hbm %s3487_s18, 8192  ;;  %s2444_s27 = scalar_lea.hbm %s3688_s15, 49152 }
 0x31d   : > { %p2441_p0 = scmp.ne.s32.totalorder %s3487_s18, %s2440_s9  ;;  %p2445_p9 = scmp.lt.u32.totalorder %s3487_s18, %s3688_s15 }
 0x31e   : > { %p2446_p5 = scmp.lt.u32.totalorder %s2444_s27, %s2440_s9  ;;  %p2448_p12 = scmp.lt.u32.totalorder %s2440_s9, %s3487_s18 }
 0x31f   : > { %p2442_p7 = pnand %p2441_p0, %p3689_p4 }
 0x320   : > { %p2447_p1 = por %p2446_p5, %p2445_p9 }
 0x321   : > { %p2443_p13 = pneg %p2442_p7 }
 0x322   : > { %p2449_p6 = por %p2448_p12, %p2447_p1 }
 0x324   : > { %p2450_p11 = pnand %p2449_p6, %p2443_p13 }
 0x326   : > { %2453 = shalt.err (!%p2450_p11)
}
 0x327   : > { %s2596_s7 = smov 256   ;;  %s2597_s16 = smov 768  }
 0x328   : > { %s2598_s8 = smov 16  }
 0x329   : > { %1939 = dma.vmem_to_hbm [thread:$0]  (%p3689_p4), %s3491_s19, 8192, %s3487_s18, %s3501_s22, %s2596_s7, %s2597_s16, %s2598_s8  }
 0x32a PF: > { %s3690_s30 = sld [smem:[#allocation22_spill]]  ;;  %p1968_p8 = scmp.ge.s32.totalorder %s2584_s14, 2 }
 0x32b   : > { %p3691_p3 = scmp.ne.s32.totalorder %s3661_s1, 0 }
 0x32d   : > { %p1964_p10 = pnand %p1968_p8, %p3691_p3 }
 0x330   : > { %s1570_s13 = sand.u32 1, %s3690_s30  }
 0x331   : > { %s1571_s3 = scalar_lea.sflag [#allocation6], %s1570_s13 }
 0x332   : > { %2527 = dma.done.wait (!%p1964_p10), %s1571_s3, 8192  }
 0x333   : > { %2529 = vsyncadd (!%p1964_p10), %s1571_s3, 4294959104  ;;  %s32_s14 = sadd.s32 1, %s2584_s14   ;;  %s3693_s4 = sld [smem:[#allocation36_spill]] }
 0x334   : > { %p3530_p2 = scmp.ge.s32.totalorder %s32_s14, 8   ;;  %s3694_s30 = sld [smem:[#allocation23_spill]] }
 0x335   : > { %s3695_s8 = sld [smem:[#allocation24_spill]]  ;;  %s3696_s9 = sld [smem:[#allocation34_spill]] }
 0x336   : > { %s3697_s10 = sld [smem:[#allocation27_spill]]  ;;  %s3698_s11 = sld [smem:[#allocation28_spill]] }
 0x337   : > { %s3699_s12 = sld [smem:[#allocation32_spill]]  ;;  %s3700_s13 = sld [smem:[#allocation33_spill]] }
 0x338   : > { %s3701_s24 = smov %s2536_s25  ;;  %s3702_s25 = smov %s2540_s26 }
 0x339   : > { %s3703_s26 = smov %s2910_s17  ;;  %s3704_s27 = smov %s2548_s28 }
 0x33a   : > { %s3705_s28 = smov %s2552_s29  ;;  %s3706_s29 = smov %s3693_s4 }
 0x33b   :  { %31 = sbr.rel (!%p3530_p2) target bundleno = 25 (0x19), region = 169 }
 0x342   :  { %1576 = vsyncpa [#allocation5], 1 }
 0x343   :  { %1578 = vsyncpa [#allocation5 + $0x1], 1 }
 0x344   :  { %1579 = vsyncpa [#allocation8], 1 }
 0x345   :  { %1581 = vsyncpa [#allocation8 + $0x1], 1 }
 0x346   :  { %1582 = vsyncpa [#allocation11], 1 }
 0x347   :  { %1584 = vsyncpa [#allocation11 + $0x1], 1 }
 0x348   :  { %1585 = vsyncpa [#allocation14], 1 }
 0x349   :  { %1587 = vsyncpa [#allocation14 + $0x1], 1 }
 0x34a   :  { %1588 = vsyncpa [#allocation6], 1 }
 0x34b   :  { %1590 = vsyncpa [#allocation6 + $0x1], 1 }

</bundles_post_ra>
